<compile_context>
chip_gen: v5e
topology: v5e:2x2
jax: 0.10.0
libtpu: 0.0.40
codegen_flags: <defaults>
</compile_context>

<pallas_src>
import functools
import math

import jax
import jax.numpy as jnp
from jax.experimental import pallas as pl
from jax.experimental.pallas import tpu as pltpu


# ----------------------------------------------------------------------------
# Generation-aware budgets (v5e/v6e: 128 MiB VMEM, 1 TC; v7x: 64 MiB, 2 TCs)
# ----------------------------------------------------------------------------

def _query_vmem_capacity():
    try:
        return int(pltpu.get_tpu_info().vmem_capacity_bytes)
    except Exception:
        return 0


_VMEM_CAP = _query_vmem_capacity()
if _VMEM_CAP >= 96 * 1024 * 1024:          # v5e / v6e class (128 MiB per core)
    _VMEM_LIMIT = 64 * 1024 * 1024
    _TN_TARGET, _TK_TARGET = 1024, 1024
    _KV_TILE_TARGET = 512
    _DEEP_WEIGHT_BUFFER = True             # pl.Buffered(3) on the K-loop weight spec
elif _VMEM_CAP > 0:                        # v7x class (64 MiB per TensorCore)
    _VMEM_LIMIT = min(48 * 1024 * 1024, _VMEM_CAP * 3 // 4)
    _TN_TARGET, _TK_TARGET = 512, 512
    _KV_TILE_TARGET = 256
    _DEEP_WEIGHT_BUFFER = False
else:                                      # unknown: conservative defaults
    _VMEM_LIMIT = 32 * 1024 * 1024
    _TN_TARGET, _TK_TARGET = 512, 512
    _KV_TILE_TARGET = 256
    _DEEP_WEIGHT_BUFFER = False


# ----------------------------------------------------------------------------
# Helpers
# ----------------------------------------------------------------------------

def _pick_tile(dim, target, align):
    """Largest tile <= target that divides `dim` and is a multiple of `align`,
    falling back to the full dimension (always a legal BlockSpec block)."""
    if dim <= target:
        return dim
    t = (target // align) * align
    while t >= align:
        if dim % t == 0:
            return t
        t -= align
    return dim


def _row_tile(dim, target=256):
    """Row (sublane) tile: prefer 16-row alignment for bf16 packing and at
    least 2 blocks so the parallel M axis can shard across v7x's 2 TCs."""
    align = 16 if (dim % 16 == 0 and dim >= 32) else 8
    if dim >= 2 * align:
        target = min(target, max(align, dim // 2))
    return _pick_tile(dim, target, align)


def _gelu(y):
    # TODO(synk): HF VideoMAE uses exact erf GELU; tanh approximation used here
    # (EUP-friendly on TPU).
    c = math.sqrt(2.0 / math.pi)
    return 0.5 * y * (1.0 + jnp.tanh(c * (y + 0.044715 * y * y * y)))


# ----------------------------------------------------------------------------
# Pallas kernels
# ----------------------------------------------------------------------------

def _linear_bias_res_kernel(x_ref, w_ref, b_ref, res_ref, o_ref, acc_ref,
                            *, activation, nk):
    """Tiled matmul (bf16 in / f32 VMEM accumulator); bias + activation +
    residual add fused into the k==last epilogue (stored bf16)."""
    @pl.when(pl.program_id(2) == 0)
    def _():
        acc_ref[...] = jnp.zeros_like(acc_ref)

    acc_ref[...] += jnp.dot(x_ref[...], w_ref[...],
                            preferred_element_type=jnp.float32)

    @pl.when(pl.program_id(2) == nk - 1)
    def _():
        y = acc_ref[...] + b_ref[...].astype(jnp.float32)
        if activation == "gelu":
            y = _gelu(y)
        y = y + res_ref[...].astype(jnp.float32)
        o_ref[...] = y.astype(o_ref.dtype)


def linear_bias_res(x, w, b, res, *, activation=None, out_dtype=jnp.bfloat16):
    """y = act(x @ w + b) + res. x:(M,K) bf16, w:(K,N) bf16, b:(N,), res:(R,N)
    with R == M or R | M (residual rows indexed modulo R, e.g. the pos table)."""
    M, K = x.shape
    N = w.shape[1]
    R = res.shape[0]
    tm = _row_tile(math.gcd(M, R))
    tn = _pick_tile(N, _TN_TARGET, 128)
    tk = _pick_tile(K, _TK_TARGET, 128)
    nk = K // tk
    rb = R // tm
    grid = (M // tm, N // tn, nk)

    w_kwargs = {}
    if _DEEP_WEIGHT_BUFFER and nk >= 3:
        # Deeper weight buffering on the reduction axis (v5e/v6e only).
        w_kwargs["pipeline_mode"] = pl.Buffered(3)
    # TODO(synk): the res tile is only needed in the k==last epilogue; a manual
    # late-started make_async_copy would free ~1 tile of VMEM during the K loop.

    return pl.pallas_call(
        functools.partial(_linear_bias_res_kernel, activation=activation, nk=nk),
        grid=grid,
        in_specs=[
            pl.BlockSpec((tm, tk), lambda i, j, k: (i, k)),
            pl.BlockSpec((tk, tn), lambda i, j, k: (k, j), **w_kwargs),
            pl.BlockSpec((1, tn), lambda i, j, k: (0, j)),
            pl.BlockSpec((tm, tn), lambda i, j, k: (i % rb, j)),
        ],
        out_specs=pl.BlockSpec((tm, tn), lambda i, j, k: (i, j)),
        out_shape=jax.ShapeDtypeStruct((M, N), out_dtype),
        scratch_shapes=[pltpu.VMEM((tm, tn), jnp.float32)],
        compiler_params=pltpu.CompilerParams(
            dimension_semantics=("parallel", "parallel", "arbitrary"),
            vmem_limit_bytes=_VMEM_LIMIT,
        ),
    )(x, w, b.reshape(1, N), res)


def _ln_linear_kernel(x_ref, g_ref, beta_ref, w_ref, b_ref, o_ref, xn_ref,
                      *, activation, eps):
    """LayerNorm fused into the matmul that consumes it; the LN result is
    cached in VMEM at j==0 and reused for all remaining N tiles."""
    @pl.when(pl.program_id(1) == 0)
    def _():
        x = x_ref[...].astype(jnp.float32)
        mean = jnp.mean(x, axis=-1, keepdims=True)
        xc = x - mean
        var = jnp.mean(xc * xc, axis=-1, keepdims=True)
        xn = xc * jax.lax.rsqrt(var + eps)
        xn = xn * g_ref[...].astype(jnp.float32) + beta_ref[...].astype(jnp.float32)
        xn_ref[...] = xn.astype(xn_ref.dtype)

    y = jnp.dot(xn_ref[...], w_ref[...], preferred_element_type=jnp.float32)
    y = y + b_ref[...].astype(jnp.float32)
    if activation == "gelu":
        y = _gelu(y)
    o_ref[...] = y.astype(o_ref.dtype)


def ln_linear(x, g, beta, w, b, *, activation=None, out_dtype=jnp.bfloat16,
              eps=1e-12):
    """y = act(LN(x) @ w + b). K kept whole per block (LN needs the full row);
    N tiled with the LN result cached in a (tm, K) bf16 scratch."""
    M, K = x.shape
    N = w.shape[1]
    tm = _row_tile(M)
    tn = _pick_tile(N, _TN_TARGET, 128)
    grid = (M // tm, N // tn)
    return pl.pallas_call(
        functools.partial(_ln_linear_kernel, activation=activation, eps=eps),
        grid=grid,
        in_specs=[
            pl.BlockSpec((tm, K), lambda i, j: (i, 0)),
            pl.BlockSpec((1, K), lambda i, j: (0, 0)),
            pl.BlockSpec((1, K), lambda i, j: (0, 0)),
            pl.BlockSpec((K, tn), lambda i, j: (0, j)),
            pl.BlockSpec((1, tn), lambda i, j: (0, j)),
        ],
        out_specs=pl.BlockSpec((tm, tn), lambda i, j: (i, j)),
        out_shape=jax.ShapeDtypeStruct((M, N), out_dtype),
        scratch_shapes=[pltpu.VMEM((tm, K), jnp.bfloat16)],
        compiler_params=pltpu.CompilerParams(
            dimension_semantics=("parallel", "arbitrary"),
            vmem_limit_bytes=_VMEM_LIMIT,
        ),
    )(x, g.reshape(1, K), beta.reshape(1, K), w, b.reshape(1, N))


def _ln_qkv_kernel(x_ref, g_ref, beta_ref, w_ref, b_ref, q_ref, k_ref, v_ref,
                   *, eps, d):
    """LN1 fused into the single (D, 3D) QKV matmul; writes q/k/v as three
    separate (tms, D) blocks (no XLA head split/merge transposes needed)."""
    x = x_ref[...].astype(jnp.float32)
    mean = jnp.mean(x, axis=-1, keepdims=True)
    xc = x - mean
    var = jnp.mean(xc * xc, axis=-1, keepdims=True)
    xn = xc * jax.lax.rsqrt(var + eps)
    xn = xn * g_ref[...].astype(jnp.float32) + beta_ref[...].astype(jnp.float32)
    y = jnp.dot(xn.astype(jnp.bfloat16), w_ref[...],
                preferred_element_type=jnp.float32)
    y = (y + b_ref[...].astype(jnp.float32)).astype(q_ref.dtype)
    q_ref[...] = y[:, :d]
    k_ref[...] = y[:, d:2 * d]
    v_ref[...] = y[:, 2 * d:]


def ln_qkv(x, g, beta, w, b, *, eps=1e-12):
    """x: (B, S, D) bf16 -> (q, k, v) each (B, S, D) bf16 (scale pre-folded into w_q)."""
    B, S, D = x.shape
    N = w.shape[1]           # 3D
    tms = _pick_tile(S, 256, 16 if S % 16 == 0 else 8)
    grid = (B, S // tms)
    tok_spec = pl.BlockSpec((None, tms, D), lambda bi, si: (bi, si, 0))
    return pl.pallas_call(
        functools.partial(_ln_qkv_kernel, eps=eps, d=D),
        grid=grid,
        in_specs=[
            tok_spec,
            pl.BlockSpec((1, D), lambda bi, si: (0, 0)),
            pl.BlockSpec((1, D), lambda bi, si: (0, 0)),
            pl.BlockSpec((D, N), lambda bi, si: (0, 0)),
            pl.BlockSpec((1, N), lambda bi, si: (0, 0)),
        ],
        out_specs=(tok_spec, tok_spec, tok_spec),
        out_shape=(jax.ShapeDtypeStruct((B, S, D), jnp.bfloat16),
                   jax.ShapeDtypeStruct((B, S, D), jnp.bfloat16),
                   jax.ShapeDtypeStruct((B, S, D), jnp.bfloat16)),
        compiler_params=pltpu.CompilerParams(
            dimension_semantics=("parallel", "parallel"),
            vmem_limit_bytes=_VMEM_LIMIT,
        ),
    )(x, g.reshape(1, D), beta.reshape(1, D), w, b.reshape(1, N))


def _flash_attn_kernel(q_ref, k_ref, v_ref, o_ref, m_sc, l_sc, acc_sc,
                       *, nheads, hd, nkv):
    """Flash-style online-softmax attention over KV tiles. q/k/v stay bf16 into
    the MXU (f32 accumulation); normalization deferred to the last KV step.
    1/sqrt(hd) is folded into w_q at init, so no score scaling here."""
    ki = pl.program_id(2)

    @pl.when(ki == 0)
    def _():
        m_sc[...] = jnp.full(m_sc.shape, -jnp.inf, dtype=m_sc.dtype)
        l_sc[...] = jnp.zeros_like(l_sc)
        acc_sc[...] = jnp.zeros_like(acc_sc)

    q = q_ref[...]           # (tq,  D) bf16
    k = k_ref[...]           # (tkv, D) bf16
    v = v_ref[...]           # (tkv, D) bf16

    # TODO(synk): at real scale (hd=64) process 2-head / 128-lane column groups
    # via BlockSpec column index_maps instead of full-D blocks + in-register slices.
    for h in range(nheads):
        sl = slice(h * hd, (h + 1) * hd)
        s = jax.lax.dot_general(q[:, sl], k[:, sl],
                                (((1,), (1,)), ((), ())),
                                preferred_element_type=jnp.float32)   # (tq, tkv)
        m_prev = m_sc[h]                                              # (tq, 1)
        m_new = jnp.maximum(m_prev, jnp.max(s, axis=-1, keepdims=True))
        alpha = jnp.exp(m_prev - m_new)
        p = jnp.exp(s - m_new)
        l_sc[h] = alpha * l_sc[h] + jnp.sum(p, axis=-1, keepdims=True)
        acc_sc[h] = alpha * acc_sc[h] + jnp.dot(
            p.astype(jnp.bfloat16), v[:, sl], preferred_element_type=jnp.float32)
        m_sc[h] = m_new

    @pl.when(ki == nkv - 1)
    def _():
        for h in range(nheads):
            inv = pl.reciprocal(l_sc[h], approx=True)
            o_ref[:, h * hd:(h + 1) * hd] = (acc_sc[h] * inv).astype(o_ref.dtype)


def flash_attention(q, k, v, *, nheads):
    """q/k/v: (B, S, D) bf16 -> (B, S, D) bf16."""
    B, S, D = q.shape
    hd = D // nheads
    row_align = 16 if S % 16 == 0 else 8
    tq = _pick_tile(S, 256, row_align)
    tkv = _pick_tile(S, _KV_TILE_TARGET, row_align)
    nkv = S // tkv
    grid = (B, S // tq, nkv)
    q_spec = pl.BlockSpec((None, tq, D), lambda bi, qi, ki: (bi, qi, 0))
    kv_spec = pl.BlockSpec((None, tkv, D), lambda bi, qi, ki: (bi, ki, 0))
    return pl.pallas_call(
        functools.partial(_flash_attn_kernel, nheads=nheads, hd=hd, nkv=nkv),
        grid=grid,
        in_specs=[q_spec, kv_spec, kv_spec],
        out_specs=pl.BlockSpec((None, tq, D), lambda bi, qi, ki: (bi, qi, 0)),
        out_shape=jax.ShapeDtypeStruct((B, S, D), jnp.bfloat16),
        scratch_shapes=[
            pltpu.VMEM((nheads, tq, 1), jnp.float32),    # running max
            pltpu.VMEM((nheads, tq, 1), jnp.float32),    # running denom
            pltpu.VMEM((nheads, tq, hd), jnp.float32),   # un-normalized output
        ],
        compiler_params=pltpu.CompilerParams(
            dimension_semantics=("parallel", "arbitrary", "arbitrary"),
            vmem_limit_bytes=_VMEM_LIMIT,
        ),
    )(q, k, v)


def _pooled_head_kernel(x_ref, g_ref, b_ref, w_ref, bias_ref, o_ref, *, eps):
    """Fused epilogue: mean-pool over tokens -> fc_norm -> folded (classifier@fc_final)."""
    x = x_ref[...].astype(jnp.float32)          # (B, S, D)
    pooled = jnp.mean(x, axis=1)                # (B, D)
    mean = jnp.mean(pooled, axis=-1, keepdims=True)
    xc = pooled - mean
    var = jnp.mean(xc * xc, axis=-1, keepdims=True)
    xn = xc * jax.lax.rsqrt(var + eps)
    xn = xn * g_ref[...] + b_ref[...]
    y = jnp.dot(xn, w_ref[...], preferred_element_type=jnp.float32)
    y = y + bias_ref[...]
    o_ref[...] = y.astype(o_ref.dtype)


def pooled_head(x, g, b, w, bias, eps=1e-12):
    B, S, D = x.shape
    F = w.shape[1]
    return pl.pallas_call(
        functools.partial(_pooled_head_kernel, eps=eps),
        out_shape=jax.ShapeDtypeStruct((B, F), jnp.float32),
        compiler_params=pltpu.CompilerParams(vmem_limit_bytes=_VMEM_LIMIT),
    )(x, g.reshape(1, D), b.reshape(1, D), w, bias.reshape(1, F))


# ----------------------------------------------------------------------------
# Model: scaled-down VideoMAEForVideoClassification + fc_final
# ----------------------------------------------------------------------------

CFG = dict(
    batch=2,
    num_frames=4,
    channels=3,
    image_size=16,
    tubelet_size=2,
    patch_size=8,
    hidden=32,          # stands in for 768
    heads=4,
    layers=2,           # stands in for 12 encoder layers
    intermediate=64,    # MLP expansion (3072 stand-in)
    final_dim=16,       # stands in for fc_final's 512
)


def _sinusoid_table(n_pos, d):
    # VideoMAE fixed (non-learned) sinusoidal position embeddings.
    pos = jnp.arange(n_pos, dtype=jnp.float32)[:, None]
    i = jnp.arange(d)[None, :]
    angle = pos / jnp.power(10000.0, (2 * (i // 2)).astype(jnp.float32) / d)
    return jnp.where(i % 2 == 0, jnp.sin(angle), jnp.cos(angle)).astype(jnp.float32)


def init_params(key, cfg):
    D = cfg["hidden"]
    C, t, p = cfg["channels"], cfg["tubelet_size"], cfg["patch_size"]
    nt = cfg["num_frames"] // t
    nsp = cfg["image_size"] // p
    S = nt * nsp * nsp
    K_patch = C * t * p * p
    I = cfg["intermediate"]
    F = cfg["final_dim"]
    hd = D // cfg["heads"]
    attn_scale = 1.0 / math.sqrt(hd)

    def nrm(k, shape):
        return 0.02 * jax.random.normal(k, shape, dtype=jnp.float32)

    keys = list(jax.random.split(key, 3 + 6 * cfg["layers"]))
    it = iter(keys)

    # classifier (768->768 stand-in) followed immediately by fc_final (768->512
    # stand-in) with no nonlinearity between -> fold into one matmul at init.
    cls_w = nrm(next(it), (D, D))
    cls_b = jnp.zeros((D,), jnp.float32)
    fc_final_w = nrm(next(it), (D, F))
    fc_final_b = jnp.zeros((F,), jnp.float32)
    head_w = cls_w @ fc_final_w
    head_b = cls_b @ fc_final_w + fc_final_b

    params = {
        "patch_w": nrm(next(it), (K_patch, D)).astype(jnp.bfloat16),
        "patch_b": jnp.zeros((D,), jnp.float32),
        "pos_embed": _sinusoid_table(S, D),     # (S, D), never tiled to (B*S, D)
        "fc_norm_g": jnp.ones((D,), jnp.float32),
        "fc_norm_b": jnp.zeros((D,), jnp.float32),
        "head_w": head_w,
        "head_b": head_b,
        "layers": [],
    }
    for _ in range(cfg["layers"]):
        # Fold the 1/sqrt(head_dim) attention scale into the Q projection.
        wq = nrm(next(it), (D, D)) * attn_scale
        wk = nrm(next(it), (D, D))
        wv = nrm(next(it), (D, D))
        bq = jnp.zeros((D,), jnp.float32) * attn_scale
        bk = jnp.zeros((D,), jnp.float32)   # k bias fixed to 0 in VideoMAE
        bv = jnp.zeros((D,), jnp.float32)
        lp = {
            "ln1_g": jnp.ones((D,), jnp.float32),
            "ln1_b": jnp.zeros((D,), jnp.float32),
            "w_qkv": jnp.concatenate([wq, wk, wv], axis=1).astype(jnp.bfloat16),
            "b_qkv": jnp.concatenate([bq, bk, bv]),
            "wo": nrm(next(it), (D, D)).astype(jnp.bfloat16),
            "bo": jnp.zeros((D,), jnp.float32),
            "ln2_g": jnp.ones((D,), jnp.float32),
            "ln2_b": jnp.zeros((D,), jnp.float32),
            "w1": nrm(next(it), (D, I)).astype(jnp.bfloat16),
            "b1": jnp.zeros((I,), jnp.float32),
            "w2": nrm(next(it), (I, D)).astype(jnp.bfloat16),
            "b2": jnp.zeros((D,), jnp.float32),
        }
        params["layers"].append(lp)
    return params


def videomae_feature_forward(params, x, cfg):
    # x: (B, T, C, H, W) — matches the PyTorch module's `x.view(bs, T, C, H, W)`.
    B, T, C, H, W = x.shape
    t, p = cfg["tubelet_size"], cfg["patch_size"]
    nt, nh, nw = T // t, H // p, W // p
    S = nt * nh * nw
    D = cfg["hidden"]
    nH = cfg["heads"]

    # Patch embedding == Conv3d(C, D, kernel=(t,p,p), stride=(t,p,p)) as a matmul.
    # bf16 cast happens BEFORE the transpose chain to halve its HBM traffic.
    # TODO(synk): express the tubelet/patch gather inside the patch-embed kernel
    # (BlockSpec index_map) instead of this XLA transpose/reshape chain.
    xp = x.astype(jnp.bfloat16)
    xp = jnp.transpose(xp, (0, 2, 1, 3, 4))                 # (B, C, T, H, W)
    xp = xp.reshape(B, C, nt, t, nh, p, nw, p)
    xp = jnp.transpose(xp, (0, 2, 4, 6, 1, 3, 5, 7))        # (B, nt, nh, nw, C, t, p, p)
    xp = xp.reshape(B * S, C * t * p * p)

    # Fixed sinusoid pos-emb fused in as the (S, D) residual of the patch matmul.
    h = linear_bias_res(xp, params["patch_w"], params["patch_b"],
                        params["pos_embed"], out_dtype=jnp.bfloat16)   # (B*S, D)

    for lp in params["layers"]:
        # --- self-attention block (pre-norm): fused LN1 + QKV -> flash attn ---
        q, k, v = ln_qkv(h.reshape(B, S, D), lp["ln1_g"], lp["ln1_b"],
                         lp["w_qkv"], lp["b_qkv"])
        ao = flash_attention(q, k, v, nheads=nH)              # (B, S, D) bf16
        h = linear_bias_res(ao.reshape(B * S, D), lp["wo"], lp["bo"], h,
                            out_dtype=jnp.bfloat16)           # residual add fused

        # --- MLP block (pre-norm): fused LN2 + W1 + GELU, then W2 + residual ---
        m1 = ln_linear(h, lp["ln2_g"], lp["ln2_b"], lp["w1"], lp["b1"],
                       activation="gelu", out_dtype=jnp.bfloat16)
        h = linear_bias_res(m1, lp["w2"], lp["b2"], h, out_dtype=jnp.bfloat16)

    # use_mean_pooling=True path: mean over tokens -> fc_norm -> folded head,
    # all in one fused epilogue kernel.
    out = pooled_head(h.reshape(B, S, D),
                      params["fc_norm_g"], params["fc_norm_b"],
                      params["head_w"], params["head_b"])
    return out


# ----------------------------------------------------------------------------

if __name__ == "__main__":
    key = jax.random.PRNGKey(0)
    kx, kp = jax.random.split(key)

    x = jax.random.normal(
        kx,
        (CFG["batch"], CFG["num_frames"], CFG["channels"],
         CFG["image_size"], CFG["image_size"]),
        dtype=jnp.float32,
    )
    params = init_params(kp, CFG)

    fwd = jax.jit(functools.partial(videomae_feature_forward, cfg=CFG))
    out = fwd(params, x)
    out = jax.block_until_ready(out)

    assert out.shape == (CFG["batch"], CFG["final_dim"]), out.shape
    assert out.dtype == jnp.float32
    assert bool(jnp.all(jnp.isfinite(out)))
    print("KERNEL_OK")
</pallas_src>

<mosaic_0001>
module attributes {stable_mosaic.version = 11 : i64} {
  func.func @_linear_bias_res_kernel(%arg0: i32, %arg1: i32, %arg2: i32, %arg3: memref<8x384xbf16, #tpu.memory_space<vmem>>, %arg4: memref<384x32xbf16, #tpu.memory_space<vmem>>, %arg5: memref<1x32xf32, #tpu.memory_space<vmem>>, %arg6: memref<8x32xf32, #tpu.memory_space<vmem>>, %arg7: memref<8x32xbf16, #tpu.memory_space<vmem>>, %arg8: memref<8x32xf32, #tpu.memory_space<vmem>>) attributes {dimension_semantics = [#tpu.dimension_semantics<parallel>, #tpu.dimension_semantics<parallel>, #tpu.dimension_semantics<arbitrary>], iteration_bounds = array<i64: 2, 1, 1>, scalar_prefetch = 0 : i64, scratch_operands = 1 : i64, tpu.core_type = #tpu.core_type<tc>, window_params = [{transform_indices = @transform_0, window_bounds = array<i64: 8, 384>}, {transform_indices = @transform_1, window_bounds = array<i64: 384, 32>}, {transform_indices = @transform_2, window_bounds = array<i64: 1, 32>}, {transform_indices = @transform_3, window_bounds = array<i64: 8, 32>}, {transform_indices = @transform_4, window_bounds = array<i64: 8, 32>}]} {
    %c0_i32 = arith.constant 0 : i32
    %0 = arith.cmpi eq, %arg2, %c0_i32 : i32
    %1 = arith.extui %0 : i1 to i32
    %c0_i32_0 = arith.constant 0 : i32
    %2 = arith.cmpi ne, %1, %c0_i32_0 : i32
    scf.if %2 {
      %cst_10 = arith.constant 0.000000e+00 : f32
      %12 = vector.broadcast %cst_10 : f32 to vector<8x32xf32>
      %c0_11 = arith.constant 0 : index
      %c0_12 = arith.constant 0 : index
      %13 = vector.load %arg8[%c0_11, %c0_12] : memref<8x32xf32, #tpu.memory_space<vmem>>, vector<8x32xf32>
      tpu.vector_store %arg8[%c0_11, %c0_12], %12 {strides = array<i32>} : memref<8x32xf32, #tpu.memory_space<vmem>>, vector<8x32xf32>,
    } else {
    }
    %c0 = arith.constant 0 : index
    %c0_1 = arith.constant 0 : index
    %3 = vector.load %arg8[%c0, %c0_1] : memref<8x32xf32, #tpu.memory_space<vmem>>, vector<8x32xf32>
    %c0_2 = arith.constant 0 : index
    %c0_3 = arith.constant 0 : index
    %4 = vector.load %arg3[%c0_2, %c0_3] : memref<8x384xbf16, #tpu.memory_space<vmem>>, vector<8x384xbf16>
    %c0_4 = arith.constant 0 : index
    %c0_5 = arith.constant 0 : index
    %5 = vector.load %arg4[%c0_4, %c0_5] : memref<384x32xbf16, #tpu.memory_space<vmem>>, vector<384x32xbf16>
    %cst = arith.constant dense<0.000000e+00> : vector<8x32xf32>
    %6 = tpu.matmul %4, %5, %cst {dimension_numbers = #tpu.dot_dimension_numbers<[1], [0], [0], [1], [0, 0, 1, 1], [], []>} : vector<8x384xbf16>, vector<384x32xbf16>, vector<8x32xf32> -> vector<8x32xf32>
    %7 = arith.addf %3, %6 : vector<8x32xf32>
    %c0_6 = arith.constant 0 : index
    %c0_7 = arith.constant 0 : index
    %8 = vector.load %arg8[%c0_6, %c0_7] : memref<8x32xf32, #tpu.memory_space<vmem>>, vector<8x32xf32>
    tpu.vector_store %arg8[%c0_6, %c0_7], %7 {strides = array<i32>} : memref<8x32xf32, #tpu.memory_space<vmem>>, vector<8x32xf32>,
    %c0_i32_8 = arith.constant 0 : i32
    %9 = arith.cmpi eq, %arg2, %c0_i32_8 : i32
    %10 = arith.extui %9 : i1 to i32
    %c0_i32_9 = arith.constant 0 : i32
    %11 = arith.cmpi ne, %10, %c0_i32_9 : i32
    scf.if %11 {
      %c0_10 = arith.constant 0 : index
      %c0_11 = arith.constant 0 : index
      %12 = vector.load %arg8[%c0_10, %c0_11] : memref<8x32xf32, #tpu.memory_space<vmem>>, vector<8x32xf32>
      %c0_12 = arith.constant 0 : index
      %c0_13 = arith.constant 0 : index
      %13 = vector.load %arg5[%c0_12, %c0_13] : memref<1x32xf32, #tpu.memory_space<vmem>>, vector<1x32xf32>
      %14 = vector.broadcast %13 : vector<1x32xf32> to vector<8x32xf32>
      %15 = arith.addf %12, %14 : vector<8x32xf32>
      %c0_14 = arith.constant 0 : index
      %c0_15 = arith.constant 0 : index
      %16 = vector.load %arg6[%c0_14, %c0_15] : memref<8x32xf32, #tpu.memory_space<vmem>>, vector<8x32xf32>
      %17 = arith.addf %15, %16 : vector<8x32xf32>
      %18 = arith.truncf %17 : vector<8x32xf32> to vector<8x32xbf16>
      %c0_16 = arith.constant 0 : index
      %c0_17 = arith.constant 0 : index
      %19 = vector.load %arg7[%c0_16, %c0_17] : memref<8x32xbf16, #tpu.memory_space<vmem>>, vector<8x32xbf16>
      tpu.vector_store %arg7[%c0_16, %c0_17], %18 {strides = array<i32>} : memref<8x32xbf16, #tpu.memory_space<vmem>>, vector<8x32xbf16>,
    } else {
    }
    return
  }
  func.func @transform_0(%arg0: i32, %arg1: i32, %arg2: i32) -> (i32, i32) {
    %c0_i32 = arith.constant 0 : i32
    return %arg0, %arg2 : i32, i32
  }
  func.func @transform_1(%arg0: i32, %arg1: i32, %arg2: i32) -> (i32, i32) {
    %c0_i32 = arith.constant 0 : i32
    return %arg2, %arg1 : i32, i32
  }
  func.func @transform_2(%arg0: i32, %arg1: i32, %arg2: i32) -> (i32, i32) {
    %c0_i32 = arith.constant 0 : i32
    %c0_i32_0 = arith.constant 0 : i32
    return %c0_i32, %arg1 : i32, i32
  }
  func.func @transform_3(%arg0: i32, %arg1: i32, %arg2: i32) -> (i32, i32) {
    %c1_i32 = arith.constant 1 : i32
    %c0_i32 = arith.constant 0 : i32
    %0 = arith.cmpi eq, %c1_i32, %c0_i32 : i32
    %c1_i32_0 = arith.constant 1 : i32
    %1 = arith.select %0, %c1_i32_0, %c1_i32 : i32
    %2 = arith.remsi %arg0, %1 : i32
    %c0_i32_1 = arith.constant 0 : i32
    %3 = arith.cmpi ne, %2, %c0_i32_1 : i32
    %c0_i32_2 = arith.constant 0 : i32
    %4 = arith.cmpi slt, %2, %c0_i32_2 : i32
    %c0_i32_3 = arith.constant 0 : i32
    %5 = arith.cmpi slt, %1, %c0_i32_3 : i32
    %6 = arith.xori %4, %5 : i1
    %7 = arith.andi %6, %3 : i1
    %8 = arith.addi %2, %1 : i32
    %9 = arith.select %7, %8, %2 : i32
    %c0_i32_4 = arith.constant 0 : i32
    return %9, %arg1 : i32, i32
  }
  func.func @transform_4(%arg0: i32, %arg1: i32, %arg2: i32) -> (i32, i32) {
    %c0_i32 = arith.constant 0 : i32
    return %arg0, %arg1 : i32, i32
  }
}

module attributes {stable_mosaic.version = 11 : i64} {
  func.func @_ln_qkv_kernel(%arg0: i32, %arg1: i32, %arg2: memref<1x8x32xbf16, #tpu.memory_space<vmem>>, %arg3: memref<1x32xf32, #tpu.memory_space<vmem>>, %arg4: memref<1x32xf32, #tpu.memory_space<vmem>>, %arg5: memref<32x96xbf16, #tpu.memory_space<vmem>>, %arg6: memref<1x96xf32, #tpu.memory_space<vmem>>, %arg7: memref<1x8x32xbf16, #tpu.memory_space<vmem>>, %arg8: memref<1x8x32xbf16, #tpu.memory_space<vmem>>, %arg9: memref<1x8x32xbf16, #tpu.memory_space<vmem>>) attributes {dimension_semantics = [#tpu.dimension_semantics<parallel>, #tpu.dimension_semantics<parallel>], iteration_bounds = array<i64: 2, 1>, scalar_prefetch = 0 : i64, scratch_operands = 0 : i64, tpu.core_type = #tpu.core_type<tc>, window_params = [{transform_indices = @transform_0, window_bounds = array<i64: 1, 8, 32>}, {pipeline_mode = #tpu.pipeline_mode<synchronous>, transform_indices = @transform_1, window_bounds = array<i64: 1, 32>}, {pipeline_mode = #tpu.pipeline_mode<synchronous>, transform_indices = @transform_2, window_bounds = array<i64: 1, 32>}, {pipeline_mode = #tpu.pipeline_mode<synchronous>, transform_indices = @transform_3, window_bounds = array<i64: 32, 96>}, {pipeline_mode = #tpu.pipeline_mode<synchronous>, transform_indices = @transform_4, window_bounds = array<i64: 1, 96>}, {transform_indices = @transform_5, window_bounds = array<i64: 1, 8, 32>}, {transform_indices = @transform_6, window_bounds = array<i64: 1, 8, 32>}, {transform_indices = @transform_7, window_bounds = array<i64: 1, 8, 32>}]} {
    %c0 = arith.constant 0 : index
    %c0_0 = arith.constant 0 : index
    %c0_1 = arith.constant 0 : index
    %0 = vector.load %arg2[%c0, %c0_0, %c0_1] : memref<1x8x32xbf16, #tpu.memory_space<vmem>>, vector<1x8x32xbf16>
    %1 = vector.shape_cast %0 : vector<1x8x32xbf16> to vector<8x32xbf16>
    %2 = arith.extf %1 : vector<8x32xbf16> to vector<8x32xf32>
    %cst = arith.constant dense<0.000000e+00> : vector<8xf32>
    %3 = vector.multi_reduction <add>, %2, %cst [1] : vector<8x32xf32> to vector<8xf32>
    %4 = vector.shape_cast %3 : vector<8xf32> to vector<8x1xf32>
    %cst_2 = arith.constant 3.200000e+01 : f32
    %5 = vector.broadcast %cst_2 : f32 to vector<8x1xf32>
    %6 = arith.divf %4, %5 : vector<8x1xf32>
    %7 = vector.broadcast %6 : vector<8x1xf32> to vector<8x32xf32>
    %8 = arith.subf %2, %7 : vector<8x32xf32>
    %9 = arith.mulf %8, %8 : vector<8x32xf32>
    %cst_3 = arith.constant dense<0.000000e+00> : vector<8xf32>
    %10 = vector.multi_reduction <add>, %9, %cst_3 [1] : vector<8x32xf32> to vector<8xf32>
    %11 = vector.shape_cast %10 : vector<8xf32> to vector<8x1xf32>
    %cst_4 = arith.constant 3.200000e+01 : f32
    %12 = vector.broadcast %cst_4 : f32 to vector<8x1xf32>
    %13 = arith.divf %11, %12 : vector<8x1xf32>
    %cst_5 = arith.constant 9.99999996E-13 : f32
    %14 = vector.broadcast %cst_5 : f32 to vector<8x1xf32>
    %15 = arith.addf %13, %14 : vector<8x1xf32>
    %16 = math.rsqrt %15 : vector<8x1xf32>
    %17 = vector.broadcast %16 : vector<8x1xf32> to vector<8x32xf32>
    %18 = arith.mulf %8, %17 : vector<8x32xf32>
    %c0_6 = arith.constant 0 : index
    %c0_7 = arith.constant 0 : index
    %19 = vector.load %arg3[%c0_6, %c0_7] : memref<1x32xf32, #tpu.memory_space<vmem>>, vector<1x32xf32>
    %20 = vector.broadcast %19 : vector<1x32xf32> to vector<8x32xf32>
    %21 = arith.mulf %18, %20 : vector<8x32xf32>
    %c0_8 = arith.constant 0 : index
    %c0_9 = arith.constant 0 : index
    %22 = vector.load %arg4[%c0_8, %c0_9] : memref<1x32xf32, #tpu.memory_space<vmem>>, vector<1x32xf32>
    %23 = vector.broadcast %22 : vector<1x32xf32> to vector<8x32xf32>
    %24 = arith.addf %21, %23 : vector<8x32xf32>
    %25 = arith.truncf %24 : vector<8x32xf32> to vector<8x32xbf16>
    %c0_10 = arith.constant 0 : index
    %c0_11 = arith.constant 0 : index
    %26 = vector.load %arg5[%c0_10, %c0_11] : memref<32x96xbf16, #tpu.memory_space<vmem>>, vector<32x96xbf16>
    %cst_12 = arith.constant dense<0.000000e+00> : vector<8x96xf32>
    %27 = tpu.matmul %25, %26, %cst_12 {dimension_numbers = #tpu.dot_dimension_numbers<[1], [0], [0], [1], [0, 0, 1, 1], [], []>} : vector<8x32xbf16>, vector<32x96xbf16>, vector<8x96xf32> -> vector<8x96xf32>
    %c0_13 = arith.constant 0 : index
    %c0_14 = arith.constant 0 : index
    %28 = vector.load %arg6[%c0_13, %c0_14] : memref<1x96xf32, #tpu.memory_space<vmem>>, vector<1x96xf32>
    %29 = vector.broadcast %28 : vector<1x96xf32> to vector<8x96xf32>
    %30 = arith.addf %27, %29 : vector<8x96xf32>
    %31 = arith.truncf %30 : vector<8x96xf32> to vector<8x96xbf16>
    %32 = vector.extract_strided_slice %31 {offsets = [0, 0], sizes = [8, 32], strides = [1, 1]} : vector<8x96xbf16> to vector<8x32xbf16>
    %c0_15 = arith.constant 0 : index
    %c0_16 = arith.constant 0 : index
    %c0_17 = arith.constant 0 : index
    %33 = vector.load %arg7[%c0_15, %c0_16, %c0_17] : memref<1x8x32xbf16, #tpu.memory_space<vmem>>, vector<1x8x32xbf16>
    %34 = vector.shape_cast %33 : vector<1x8x32xbf16> to vector<8x32xbf16>
    %35 = vector.shape_cast %32 : vector<8x32xbf16> to vector<1x8x32xbf16>
    tpu.vector_store %arg7[%c0_15, %c0_16, %c0_17], %35 {strides = array<i32>} : memref<1x8x32xbf16, #tpu.memory_space<vmem>>, vector<1x8x32xbf16>,
    %36 = vector.extract_strided_slice %31 {offsets = [0, 32], sizes = [8, 32], strides = [1, 1]} : vector<8x96xbf16> to vector<8x32xbf16>
    %c0_18 = arith.constant 0 : index
    %c0_19 = arith.constant 0 : index
    %c0_20 = arith.constant 0 : index
    %37 = vector.load %arg8[%c0_18, %c0_19, %c0_20] : memref<1x8x32xbf16, #tpu.memory_space<vmem>>, vector<1x8x32xbf16>
    %38 = vector.shape_cast %37 : vector<1x8x32xbf16> to vector<8x32xbf16>
    %39 = vector.shape_cast %36 : vector<8x32xbf16> to vector<1x8x32xbf16>
    tpu.vector_store %arg8[%c0_18, %c0_19, %c0_20], %39 {strides = array<i32>} : memref<1x8x32xbf16, #tpu.memory_space<vmem>>, vector<1x8x32xbf16>,
    %40 = vector.extract_strided_slice %31 {offsets = [0, 64], sizes = [8, 32], strides = [1, 1]} : vector<8x96xbf16> to vector<8x32xbf16>
    %c0_21 = arith.constant 0 : index
    %c0_22 = arith.constant 0 : index
    %c0_23 = arith.constant 0 : index
    %41 = vector.load %arg9[%c0_21, %c0_22, %c0_23] : memref<1x8x32xbf16, #tpu.memory_space<vmem>>, vector<1x8x32xbf16>
    %42 = vector.shape_cast %41 : vector<1x8x32xbf16> to vector<8x32xbf16>
    %43 = vector.shape_cast %40 : vector<8x32xbf16> to vector<1x8x32xbf16>
    tpu.vector_store %arg9[%c0_21, %c0_22, %c0_23], %43 {strides = array<i32>} : memref<1x8x32xbf16, #tpu.memory_space<vmem>>, vector<1x8x32xbf16>,
    return
  }
  func.func @transform_0(%arg0: i32, %arg1: i32) -> (i32, i32, i32) {
    %c0_i32 = arith.constant 0 : i32
    %c0_i32_0 = arith.constant 0 : i32
    return %arg0, %arg1, %c0_i32 : i32, i32, i32
  }
  func.func @transform_1(%arg0: i32, %arg1: i32) -> (i32, i32) {
    %c0_i32 = arith.constant 0 : i32
    %c0_i32_0 = arith.constant 0 : i32
    %c0_i32_1 = arith.constant 0 : i32
    return %c0_i32, %c0_i32_0 : i32, i32
  }
  func.func @transform_2(%arg0: i32, %arg1: i32) -> (i32, i32) {
    %c0_i32 = arith.constant 0 : i32
    %c0_i32_0 = arith.constant 0 : i32
    %c0_i32_1 = arith.constant 0 : i32
    return %c0_i32, %c0_i32_0 : i32, i32
  }
  func.func @transform_3(%arg0: i32, %arg1: i32) -> (i32, i32) {
    %c0_i32 = arith.constant 0 : i32
    %c0_i32_0 = arith.constant 0 : i32
    %c0_i32_1 = arith.constant 0 : i32
    return %c0_i32, %c0_i32_0 : i32, i32
  }
  func.func @transform_4(%arg0: i32, %arg1: i32) -> (i32, i32) {
    %c0_i32 = arith.constant 0 : i32
    %c0_i32_0 = arith.constant 0 : i32
    %c0_i32_1 = arith.constant 0 : i32
    return %c0_i32, %c0_i32_0 : i32, i32
  }
  func.func @transform_5(%arg0: i32, %arg1: i32) -> (i32, i32, i32) {
    %c0_i32 = arith.constant 0 : i32
    %c0_i32_0 = arith.constant 0 : i32
    return %arg0, %arg1, %c0_i32 : i32, i32, i32
  }
  func.func @transform_6(%arg0: i32, %arg1: i32) -> (i32, i32, i32) {
    %c0_i32 = arith.constant 0 : i32
    %c0_i32_0 = arith.constant 0 : i32
    return %arg0, %arg1, %c0_i32 : i32, i32, i32
  }
  func.func @transform_7(%arg0: i32, %arg1: i32) -> (i32, i32, i32) {
    %c0_i32 = arith.constant 0 : i32
    %c0_i32_0 = arith.constant 0 : i32
    return %arg0, %arg1, %c0_i32 : i32, i32, i32
  }
}

module attributes {stable_mosaic.version = 11 : i64} {
  func.func @_flash_attn_kernel(%arg0: i32, %arg1: i32, %arg2: i32, %arg3: memref<1x8x32xbf16, #tpu.memory_space<vmem>>, %arg4: memref<1x8x32xbf16, #tpu.memory_space<vmem>>, %arg5: memref<1x8x32xbf16, #tpu.memory_space<vmem>>, %arg6: memref<1x8x32xbf16, #tpu.memory_space<vmem>>, %arg7: memref<4x8x1xf32, #tpu.memory_space<vmem>>, %arg8: memref<4x8x1xf32, #tpu.memory_space<vmem>>, %arg9: memref<4x8x8xf32, #tpu.memory_space<vmem>>) attributes {dimension_semantics = [#tpu.dimension_semantics<parallel>, #tpu.dimension_semantics<arbitrary>, #tpu.dimension_semantics<arbitrary>], iteration_bounds = array<i64: 2, 1, 1>, scalar_prefetch = 0 : i64, scratch_operands = 3 : i64, tpu.core_type = #tpu.core_type<tc>, window_params = [{transform_indices = @transform_0, window_bounds = array<i64: 1, 8, 32>}, {transform_indices = @transform_1, window_bounds = array<i64: 1, 8, 32>}, {transform_indices = @transform_2, window_bounds = array<i64: 1, 8, 32>}, {transform_indices = @transform_3, window_bounds = array<i64: 1, 8, 32>}]} {
    %c0_i32 = arith.constant 0 : i32
    %0 = arith.cmpi eq, %arg2, %c0_i32 : i32
    %1 = arith.extui %0 : i1 to i32
    %c0_i32_0 = arith.constant 0 : i32
    %2 = arith.cmpi ne, %1, %c0_i32_0 : i32
    scf.if %2 {
      %cst_95 = arith.constant 0xFF800000 : f32
      %156 = vector.broadcast %cst_95 : f32 to vector<4x8x1xf32>
      %c0_96 = arith.constant 0 : index
      %c0_97 = arith.constant 0 : index
      %c0_98 = arith.constant 0 : index
      %157 = vector.load %arg7[%c0_96, %c0_97, %c0_98] : memref<4x8x1xf32, #tpu.memory_space<vmem>>, vector<4x8x1xf32>
      tpu.vector_store %arg7[%c0_96, %c0_97, %c0_98], %156 {strides = array<i32>} : memref<4x8x1xf32, #tpu.memory_space<vmem>>, vector<4x8x1xf32>,
      %cst_99 = arith.constant 0.000000e+00 : f32
      %158 = vector.broadcast %cst_99 : f32 to vector<4x8x1xf32>
      %c0_100 = arith.constant 0 : index
      %c0_101 = arith.constant 0 : index
      %c0_102 = arith.constant 0 : index
      %159 = vector.load %arg8[%c0_100, %c0_101, %c0_102] : memref<4x8x1xf32, #tpu.memory_space<vmem>>, vector<4x8x1xf32>
      tpu.vector_store %arg8[%c0_100, %c0_101, %c0_102], %158 {strides = array<i32>} : memref<4x8x1xf32, #tpu.memory_space<vmem>>, vector<4x8x1xf32>,
      %cst_103 = arith.constant 0.000000e+00 : f32
      %160 = vector.broadcast %cst_103 : f32 to vector<4x8x8xf32>
      %c0_104 = arith.constant 0 : index
      %c0_105 = arith.constant 0 : index
      %c0_106 = arith.constant 0 : index
      %161 = vector.load %arg9[%c0_104, %c0_105, %c0_106] : memref<4x8x8xf32, #tpu.memory_space<vmem>>, vector<4x8x8xf32>
      tpu.vector_store %arg9[%c0_104, %c0_105, %c0_106], %160 {strides = array<i32>} : memref<4x8x8xf32, #tpu.memory_space<vmem>>, vector<4x8x8xf32>,
    } else {
    }
    %c0 = arith.constant 0 : index
    %c0_1 = arith.constant 0 : index
    %c0_2 = arith.constant 0 : index
    %3 = vector.load %arg3[%c0, %c0_1, %c0_2] : memref<1x8x32xbf16, #tpu.memory_space<vmem>>, vector<1x8x32xbf16>
    %4 = vector.shape_cast %3 : vector<1x8x32xbf16> to vector<8x32xbf16>
    %c0_3 = arith.constant 0 : index
    %c0_4 = arith.constant 0 : index
    %c0_5 = arith.constant 0 : index
    %5 = vector.load %arg4[%c0_3, %c0_4, %c0_5] : memref<1x8x32xbf16, #tpu.memory_space<vmem>>, vector<1x8x32xbf16>
    %6 = vector.shape_cast %5 : vector<1x8x32xbf16> to vector<8x32xbf16>
    %c0_6 = arith.constant 0 : index
    %c0_7 = arith.constant 0 : index
    %c0_8 = arith.constant 0 : index
    %7 = vector.load %arg5[%c0_6, %c0_7, %c0_8] : memref<1x8x32xbf16, #tpu.memory_space<vmem>>, vector<1x8x32xbf16>
    %8 = vector.shape_cast %7 : vector<1x8x32xbf16> to vector<8x32xbf16>
    %9 = vector.extract_strided_slice %4 {offsets = [0, 0], sizes = [8, 8], strides = [1, 1]} : vector<8x32xbf16> to vector<8x8xbf16>
    %10 = vector.extract_strided_slice %6 {offsets = [0, 0], sizes = [8, 8], strides = [1, 1]} : vector<8x32xbf16> to vector<8x8xbf16>
    %cst = arith.constant dense<0.000000e+00> : vector<8x8xf32>
    %11 = tpu.matmul %9, %10, %cst {dimension_numbers = #tpu.dot_dimension_numbers<[1], [1], [0], [0], [0, 0, 1, 0], [], []>} : vector<8x8xbf16>, vector<8x8xbf16>, vector<8x8xf32> -> vector<8x8xf32>
    %c0_9 = arith.constant 0 : index
    %c0_10 = arith.constant 0 : index
    %c0_11 = arith.constant 0 : index
    %12 = vector.load %arg7[%c0_9, %c0_10, %c0_11] : memref<4x8x1xf32, #tpu.memory_space<vmem>>, vector<1x8x1xf32>
    %13 = vector.shape_cast %12 : vector<1x8x1xf32> to vector<8x1xf32>
    %cst_12 = arith.constant dense<0xFF800000> : vector<8xf32>
    %14 = vector.multi_reduction <maximumf>, %11, %cst_12 [1] : vector<8x8xf32> to vector<8xf32>
    %15 = vector.shape_cast %14 : vector<8xf32> to vector<8x1xf32>
    %16 = arith.maximumf %13, %15 : vector<8x1xf32>
    %17 = arith.subf %13, %16 : vector<8x1xf32>
    %18 = math.exp %17 : vector<8x1xf32>
    %19 = vector.broadcast %16 : vector<8x1xf32> to vector<8x8xf32>
    %20 = arith.subf %11, %19 : vector<8x8xf32>
    %21 = math.exp %20 : vector<8x8xf32>
    %c0_13 = arith.constant 0 : index
    %c0_14 = arith.constant 0 : index
    %c0_15 = arith.constant 0 : index
    %22 = vector.load %arg8[%c0_13, %c0_14, %c0_15] : memref<4x8x1xf32, #tpu.memory_space<vmem>>, vector<1x8x1xf32>
    %23 = vector.shape_cast %22 : vector<1x8x1xf32> to vector<8x1xf32>
    %24 = arith.mulf %18, %23 : vector<8x1xf32>
    %cst_16 = arith.constant dense<0.000000e+00> : vector<8xf32>
    %25 = vector.multi_reduction <add>, %21, %cst_16 [1] : vector<8x8xf32> to vector<8xf32>
    %26 = vector.shape_cast %25 : vector<8xf32> to vector<8x1xf32>
    %27 = arith.addf %24, %26 : vector<8x1xf32>
    %c0_17 = arith.constant 0 : index
    %c0_18 = arith.constant 0 : index
    %c0_19 = arith.constant 0 : index
    %28 = vector.load %arg8[%c0_17, %c0_18, %c0_19] : memref<4x8x1xf32, #tpu.memory_space<vmem>>, vector<1x8x1xf32>
    %29 = vector.shape_cast %28 : vector<1x8x1xf32> to vector<8x1xf32>
    %30 = vector.shape_cast %27 : vector<8x1xf32> to vector<1x8x1xf32>
    tpu.vector_store %arg8[%c0_17, %c0_18, %c0_19], %30 {strides = array<i32>} : memref<4x8x1xf32, #tpu.memory_space<vmem>>, vector<1x8x1xf32>,
    %c0_20 = arith.constant 0 : index
    %c0_21 = arith.constant 0 : index
    %c0_22 = arith.constant 0 : index
    %31 = vector.load %arg9[%c0_20, %c0_21, %c0_22] : memref<4x8x8xf32, #tpu.memory_space<vmem>>, vector<1x8x8xf32>
    %32 = vector.shape_cast %31 : vector<1x8x8xf32> to vector<8x8xf32>
    %33 = vector.broadcast %18 : vector<8x1xf32> to vector<8x8xf32>
    %34 = arith.mulf %33, %32 : vector<8x8xf32>
    %35 = arith.truncf %21 : vector<8x8xf32> to vector<8x8xbf16>
    %36 = vector.extract_strided_slice %8 {offsets = [0, 0], sizes = [8, 8], strides = [1, 1]} : vector<8x32xbf16> to vector<8x8xbf16>
    %cst_23 = arith.constant dense<0.000000e+00> : vector<8x8xf32>
    %37 = tpu.matmul %35, %36, %cst_23 {dimension_numbers = #tpu.dot_dimension_numbers<[1], [0], [0], [1], [0, 0, 1, 1], [], []>} : vector<8x8xbf16>, vector<8x8xbf16>, vector<8x8xf32> -> vector<8x8xf32>
    %38 = arith.addf %34, %37 : vector<8x8xf32>
    %c0_24 = arith.constant 0 : index
    %c0_25 = arith.constant 0 : index
    %c0_26 = arith.constant 0 : index
    %39 = vector.load %arg9[%c0_24, %c0_25, %c0_26] : memref<4x8x8xf32, #tpu.memory_space<vmem>>, vector<1x8x8xf32>
    %40 = vector.shape_cast %39 : vector<1x8x8xf32> to vector<8x8xf32>
    %41 = vector.shape_cast %38 : vector<8x8xf32> to vector<1x8x8xf32>
    tpu.vector_store %arg9[%c0_24, %c0_25, %c0_26], %41 {strides = array<i32>} : memref<4x8x8xf32, #tpu.memory_space<vmem>>, vector<1x8x8xf32>,
    %c0_27 = arith.constant 0 : index
    %c0_28 = arith.constant 0 : index
    %c0_29 = arith.constant 0 : index
    %42 = vector.load %arg7[%c0_27, %c0_28, %c0_29] : memref<4x8x1xf32, #tpu.memory_space<vmem>>, vector<1x8x1xf32>
    %43 = vector.shape_cast %42 : vector<1x8x1xf32> to vector<8x1xf32>
    %44 = vector.shape_cast %16 : vector<8x1xf32> to vector<1x8x1xf32>
    tpu.vector_store %arg7[%c0_27, %c0_28, %c0_29], %44 {strides = array<i32>} : memref<4x8x1xf32, #tpu.memory_space<vmem>>, vector<1x8x1xf32>,
    %45 = vector.extract_strided_slice %4 {offsets = [0, 8], sizes = [8, 8], strides = [1, 1]} : vector<8x32xbf16> to vector<8x8xbf16>
    %46 = vector.extract_strided_slice %6 {offsets = [0, 8], sizes = [8, 8], strides = [1, 1]} : vector<8x32xbf16> to vector<8x8xbf16>
    %cst_30 = arith.constant dense<0.000000e+00> : vector<8x8xf32>
    %47 = tpu.matmul %45, %46, %cst_30 {dimension_numbers = #tpu.dot_dimension_numbers<[1], [1], [0], [0], [0, 0, 1, 0], [], []>} : vector<8x8xbf16>, vector<8x8xbf16>, vector<8x8xf32> -> vector<8x8xf32>
    %c1 = arith.constant 1 : index
    %c0_31 = arith.constant 0 : index
    %c0_32 = arith.constant 0 : index
    %48 = vector.load %arg7[%c1, %c0_31, %c0_32] : memref<4x8x1xf32, #tpu.memory_space<vmem>>, vector<1x8x1xf32>
    %49 = vector.shape_cast %48 : vector<1x8x1xf32> to vector<8x1xf32>
    %cst_33 = arith.constant dense<0xFF800000> : vector<8xf32>
    %50 = vector.multi_reduction <maximumf>, %47, %cst_33 [1] : vector<8x8xf32> to vector<8xf32>
    %51 = vector.shape_cast %50 : vector<8xf32> to vector<8x1xf32>
    %52 = arith.maximumf %49, %51 : vector<8x1xf32>
    %53 = arith.subf %49, %52 : vector<8x1xf32>
    %54 = math.exp %53 : vector<8x1xf32>
    %55 = vector.broadcast %52 : vector<8x1xf32> to vector<8x8xf32>
    %56 = arith.subf %47, %55 : vector<8x8xf32>
    %57 = math.exp %56 : vector<8x8xf32>
    %c1_34 = arith.constant 1 : index
    %c0_35 = arith.constant 0 : index
    %c0_36 = arith.constant 0 : index
    %58 = vector.load %arg8[%c1_34, %c0_35, %c0_36] : memref<4x8x1xf32, #tpu.memory_space<vmem>>, vector<1x8x1xf32>
    %59 = vector.shape_cast %58 : vector<1x8x1xf32> to vector<8x1xf32>
    %60 = arith.mulf %54, %59 : vector<8x1xf32>
    %cst_37 = arith.constant dense<0.000000e+00> : vector<8xf32>
    %61 = vector.multi_reduction <add>, %57, %cst_37 [1] : vector<8x8xf32> to vector<8xf32>
    %62 = vector.shape_cast %61 : vector<8xf32> to vector<8x1xf32>
    %63 = arith.addf %60, %62 : vector<8x1xf32>
    %c1_38 = arith.constant 1 : index
    %c0_39 = arith.constant 0 : index
    %c0_40 = arith.constant 0 : index
    %64 = vector.load %arg8[%c1_38, %c0_39, %c0_40] : memref<4x8x1xf32, #tpu.memory_space<vmem>>, vector<1x8x1xf32>
    %65 = vector.shape_cast %64 : vector<1x8x1xf32> to vector<8x1xf32>
    %66 = vector.shape_cast %63 : vector<8x1xf32> to vector<1x8x1xf32>
    tpu.vector_store %arg8[%c1_38, %c0_39, %c0_40], %66 {strides = array<i32>} : memref<4x8x1xf32, #tpu.memory_space<vmem>>, vector<1x8x1xf32>,
    %c1_41 = arith.constant 1 : index
    %c0_42 = arith.constant 0 : index
    %c0_43 = arith.constant 0 : index
    %67 = vector.load %arg9[%c1_41, %c0_42, %c0_43] : memref<4x8x8xf32, #tpu.memory_space<vmem>>, vector<1x8x8xf32>
    %68 = vector.shape_cast %67 : vector<1x8x8xf32> to vector<8x8xf32>
    %69 = vector.broadcast %54 : vector<8x1xf32> to vector<8x8xf32>
    %70 = arith.mulf %69, %68 : vector<8x8xf32>
    %71 = arith.truncf %57 : vector<8x8xf32> to vector<8x8xbf16>
    %72 = vector.extract_strided_slice %8 {offsets = [0, 8], sizes = [8, 8], strides = [1, 1]} : vector<8x32xbf16> to vector<8x8xbf16>
    %cst_44 = arith.constant dense<0.000000e+00> : vector<8x8xf32>
    %73 = tpu.matmul %71, %72, %cst_44 {dimension_numbers = #tpu.dot_dimension_numbers<[1], [0], [0], [1], [0, 0, 1, 1], [], []>} : vector<8x8xbf16>, vector<8x8xbf16>, vector<8x8xf32> -> vector<8x8xf32>
    %74 = arith.addf %70, %73 : vector<8x8xf32>
    %c1_45 = arith.constant 1 : index
    %c0_46 = arith.constant 0 : index
    %c0_47 = arith.constant 0 : index
    %75 = vector.load %arg9[%c1_45, %c0_46, %c0_47] : memref<4x8x8xf32, #tpu.memory_space<vmem>>, vector<1x8x8xf32>
    %76 = vector.shape_cast %75 : vector<1x8x8xf32> to vector<8x8xf32>
    %77 = vector.shape_cast %74 : vector<8x8xf32> to vector<1x8x8xf32>
    tpu.vector_store %arg9[%c1_45, %c0_46, %c0_47], %77 {strides = array<i32>} : memref<4x8x8xf32, #tpu.memory_space<vmem>>, vector<1x8x8xf32>,
    %c1_48 = arith.constant 1 : index
    %c0_49 = arith.constant 0 : index
    %c0_50 = arith.constant 0 : index
    %78 = vector.load %arg7[%c1_48, %c0_49, %c0_50] : memref<4x8x1xf32, #tpu.memory_space<vmem>>, vector<1x8x1xf32>
    %79 = vector.shape_cast %78 : vector<1x8x1xf32> to vector<8x1xf32>
    %80 = vector.shape_cast %52 : vector<8x1xf32> to vector<1x8x1xf32>
    tpu.vector_store %arg7[%c1_48, %c0_49, %c0_50], %80 {strides = array<i32>} : memref<4x8x1xf32, #tpu.memory_space<vmem>>, vector<1x8x1xf32>,
    %81 = vector.extract_strided_slice %4 {offsets = [0, 16], sizes = [8, 8], strides = [1, 1]} : vector<8x32xbf16> to vector<8x8xbf16>
    %82 = vector.extract_strided_slice %6 {offsets = [0, 16], sizes = [8, 8], strides = [1, 1]} : vector<8x32xbf16> to vector<8x8xbf16>
    %cst_51 = arith.constant dense<0.000000e+00> : vector<8x8xf32>
    %83 = tpu.matmul %81, %82, %cst_51 {dimension_numbers = #tpu.dot_dimension_numbers<[1], [1], [0], [0], [0, 0, 1, 0], [], []>} : vector<8x8xbf16>, vector<8x8xbf16>, vector<8x8xf32> -> vector<8x8xf32>
    %c2 = arith.constant 2 : index
    %c0_52 = arith.constant 0 : index
    %c0_53 = arith.constant 0 : index
    %84 = vector.load %arg7[%c2, %c0_52, %c0_53] : memref<4x8x1xf32, #tpu.memory_space<vmem>>, vector<1x8x1xf32>
    %85 = vector.shape_cast %84 : vector<1x8x1xf32> to vector<8x1xf32>
    %cst_54 = arith.constant dense<0xFF800000> : vector<8xf32>
    %86 = vector.multi_reduction <maximumf>, %83, %cst_54 [1] : vector<8x8xf32> to vector<8xf32>
    %87 = vector.shape_cast %86 : vector<8xf32> to vector<8x1xf32>
    %88 = arith.maximumf %85, %87 : vector<8x1xf32>
    %89 = arith.subf %85, %88 : vector<8x1xf32>
    %90 = math.exp %89 : vector<8x1xf32>
    %91 = vector.broadcast %88 : vector<8x1xf32> to vector<8x8xf32>
    %92 = arith.subf %83, %91 : vector<8x8xf32>
    %93 = math.exp %92 : vector<8x8xf32>
    %c2_55 = arith.constant 2 : index
    %c0_56 = arith.constant 0 : index
    %c0_57 = arith.constant 0 : index
    %94 = vector.load %arg8[%c2_55, %c0_56, %c0_57] : memref<4x8x1xf32, #tpu.memory_space<vmem>>, vector<1x8x1xf32>
    %95 = vector.shape_cast %94 : vector<1x8x1xf32> to vector<8x1xf32>
    %96 = arith.mulf %90, %95 : vector<8x1xf32>
    %cst_58 = arith.constant dense<0.000000e+00> : vector<8xf32>
    %97 = vector.multi_reduction <add>, %93, %cst_58 [1] : vector<8x8xf32> to vector<8xf32>
    %98 = vector.shape_cast %97 : vector<8xf32> to vector<8x1xf32>
    %99 = arith.addf %96, %98 : vector<8x1xf32>
    %c2_59 = arith.constant 2 : index
    %c0_60 = arith.constant 0 : index
    %c0_61 = arith.constant 0 : index
    %100 = vector.load %arg8[%c2_59, %c0_60, %c0_61] : memref<4x8x1xf32, #tpu.memory_space<vmem>>, vector<1x8x1xf32>
    %101 = vector.shape_cast %100 : vector<1x8x1xf32> to vector<8x1xf32>
    %102 = vector.shape_cast %99 : vector<8x1xf32> to vector<1x8x1xf32>
    tpu.vector_store %arg8[%c2_59, %c0_60, %c0_61], %102 {strides = array<i32>} : memref<4x8x1xf32, #tpu.memory_space<vmem>>, vector<1x8x1xf32>,
    %c2_62 = arith.constant 2 : index
    %c0_63 = arith.constant 0 : index
    %c0_64 = arith.constant 0 : index
    %103 = vector.load %arg9[%c2_62, %c0_63, %c0_64] : memref<4x8x8xf32, #tpu.memory_space<vmem>>, vector<1x8x8xf32>
    %104 = vector.shape_cast %103 : vector<1x8x8xf32> to vector<8x8xf32>
    %105 = vector.broadcast %90 : vector<8x1xf32> to vector<8x8xf32>
    %106 = arith.mulf %105, %104 : vector<8x8xf32>
    %107 = arith.truncf %93 : vector<8x8xf32> to vector<8x8xbf16>
    %108 = vector.extract_strided_slice %8 {offsets = [0, 16], sizes = [8, 8], strides = [1, 1]} : vector<8x32xbf16> to vector<8x8xbf16>
    %cst_65 = arith.constant dense<0.000000e+00> : vector<8x8xf32>
    %109 = tpu.matmul %107, %108, %cst_65 {dimension_numbers = #tpu.dot_dimension_numbers<[1], [0], [0], [1], [0, 0, 1, 1], [], []>} : vector<8x8xbf16>, vector<8x8xbf16>, vector<8x8xf32> -> vector<8x8xf32>
    %110 = arith.addf %106, %109 : vector<8x8xf32>
    %c2_66 = arith.constant 2 : index
    %c0_67 = arith.constant 0 : index
    %c0_68 = arith.constant 0 : index
    %111 = vector.load %arg9[%c2_66, %c0_67, %c0_68] : memref<4x8x8xf32, #tpu.memory_space<vmem>>, vector<1x8x8xf32>
    %112 = vector.shape_cast %111 : vector<1x8x8xf32> to vector<8x8xf32>
    %113 = vector.shape_cast %110 : vector<8x8xf32> to vector<1x8x8xf32>
    tpu.vector_store %arg9[%c2_66, %c0_67, %c0_68], %113 {strides = array<i32>} : memref<4x8x8xf32, #tpu.memory_space<vmem>>, vector<1x8x8xf32>,
    %c2_69 = arith.constant 2 : index
    %c0_70 = arith.constant 0 : index
    %c0_71 = arith.constant 0 : index
    %114 = vector.load %arg7[%c2_69, %c0_70, %c0_71] : memref<4x8x1xf32, #tpu.memory_space<vmem>>, vector<1x8x1xf32>
    %115 = vector.shape_cast %114 : vector<1x8x1xf32> to vector<8x1xf32>
    %116 = vector.shape_cast %88 : vector<8x1xf32> to vector<1x8x1xf32>
    tpu.vector_store %arg7[%c2_69, %c0_70, %c0_71], %116 {strides = array<i32>} : memref<4x8x1xf32, #tpu.memory_space<vmem>>, vector<1x8x1xf32>,
    %117 = vector.extract_strided_slice %4 {offsets = [0, 24], sizes = [8, 8], strides = [1, 1]} : vector<8x32xbf16> to vector<8x8xbf16>
    %118 = vector.extract_strided_slice %6 {offsets = [0, 24], sizes = [8, 8], strides = [1, 1]} : vector<8x32xbf16> to vector<8x8xbf16>
    %cst_72 = arith.constant dense<0.000000e+00> : vector<8x8xf32>
    %119 = tpu.matmul %117, %118, %cst_72 {dimension_numbers = #tpu.dot_dimension_numbers<[1], [1], [0], [0], [0, 0, 1, 0], [], []>} : vector<8x8xbf16>, vector<8x8xbf16>, vector<8x8xf32> -> vector<8x8xf32>
    %c3 = arith.constant 3 : index
    %c0_73 = arith.constant 0 : index
    %c0_74 = arith.constant 0 : index
    %120 = vector.load %arg7[%c3, %c0_73, %c0_74] : memref<4x8x1xf32, #tpu.memory_space<vmem>>, vector<1x8x1xf32>
    %121 = vector.shape_cast %120 : vector<1x8x1xf32> to vector<8x1xf32>
    %cst_75 = arith.constant dense<0xFF800000> : vector<8xf32>
    %122 = vector.multi_reduction <maximumf>, %119, %cst_75 [1] : vector<8x8xf32> to vector<8xf32>
    %123 = vector.shape_cast %122 : vector<8xf32> to vector<8x1xf32>
    %124 = arith.maximumf %121, %123 : vector<8x1xf32>
    %125 = arith.subf %121, %124 : vector<8x1xf32>
    %126 = math.exp %125 : vector<8x1xf32>
    %127 = vector.broadcast %124 : vector<8x1xf32> to vector<8x8xf32>
    %128 = arith.subf %119, %127 : vector<8x8xf32>
    %129 = math.exp %128 : vector<8x8xf32>
    %c3_76 = arith.constant 3 : index
    %c0_77 = arith.constant 0 : index
    %c0_78 = arith.constant 0 : index
    %130 = vector.load %arg8[%c3_76, %c0_77, %c0_78] : memref<4x8x1xf32, #tpu.memory_space<vmem>>, vector<1x8x1xf32>
    %131 = vector.shape_cast %130 : vector<1x8x1xf32> to vector<8x1xf32>
    %132 = arith.mulf %126, %131 : vector<8x1xf32>
    %cst_79 = arith.constant dense<0.000000e+00> : vector<8xf32>
    %133 = vector.multi_reduction <add>, %129, %cst_79 [1] : vector<8x8xf32> to vector<8xf32>
    %134 = vector.shape_cast %133 : vector<8xf32> to vector<8x1xf32>
    %135 = arith.addf %132, %134 : vector<8x1xf32>
    %c3_80 = arith.constant 3 : index
    %c0_81 = arith.constant 0 : index
    %c0_82 = arith.constant 0 : index
    %136 = vector.load %arg8[%c3_80, %c0_81, %c0_82] : memref<4x8x1xf32, #tpu.memory_space<vmem>>, vector<1x8x1xf32>
    %137 = vector.shape_cast %136 : vector<1x8x1xf32> to vector<8x1xf32>
    %138 = vector.shape_cast %135 : vector<8x1xf32> to vector<1x8x1xf32>
    tpu.vector_store %arg8[%c3_80, %c0_81, %c0_82], %138 {strides = array<i32>} : memref<4x8x1xf32, #tpu.memory_space<vmem>>, vector<1x8x1xf32>,
    %c3_83 = arith.constant 3 : index
    %c0_84 = arith.constant 0 : index
    %c0_85 = arith.constant 0 : index
    %139 = vector.load %arg9[%c3_83, %c0_84, %c0_85] : memref<4x8x8xf32, #tpu.memory_space<vmem>>, vector<1x8x8xf32>
    %140 = vector.shape_cast %139 : vector<1x8x8xf32> to vector<8x8xf32>
    %141 = vector.broadcast %126 : vector<8x1xf32> to vector<8x8xf32>
    %142 = arith.mulf %141, %140 : vector<8x8xf32>
    %143 = arith.truncf %129 : vector<8x8xf32> to vector<8x8xbf16>
    %144 = vector.extract_strided_slice %8 {offsets = [0, 24], sizes = [8, 8], strides = [1, 1]} : vector<8x32xbf16> to vector<8x8xbf16>
    %cst_86 = arith.constant dense<0.000000e+00> : vector<8x8xf32>
    %145 = tpu.matmul %143, %144, %cst_86 {dimension_numbers = #tpu.dot_dimension_numbers<[1], [0], [0], [1], [0, 0, 1, 1], [], []>} : vector<8x8xbf16>, vector<8x8xbf16>, vector<8x8xf32> -> vector<8x8xf32>
    %146 = arith.addf %142, %145 : vector<8x8xf32>
    %c3_87 = arith.constant 3 : index
    %c0_88 = arith.constant 0 : index
    %c0_89 = arith.constant 0 : index
    %147 = vector.load %arg9[%c3_87, %c0_88, %c0_89] : memref<4x8x8xf32, #tpu.memory_space<vmem>>, vector<1x8x8xf32>
    %148 = vector.shape_cast %147 : vector<1x8x8xf32> to vector<8x8xf32>
    %149 = vector.shape_cast %146 : vector<8x8xf32> to vector<1x8x8xf32>
    tpu.vector_store %arg9[%c3_87, %c0_88, %c0_89], %149 {strides = array<i32>} : memref<4x8x8xf32, #tpu.memory_space<vmem>>, vector<1x8x8xf32>,
    %c3_90 = arith.constant 3 : index
    %c0_91 = arith.constant 0 : index
    %c0_92 = arith.constant 0 : index
    %150 = vector.load %arg7[%c3_90, %c0_91, %c0_92] : memref<4x8x1xf32, #tpu.memory_space<vmem>>, vector<1x8x1xf32>
    %151 = vector.shape_cast %150 : vector<1x8x1xf32> to vector<8x1xf32>
    %152 = vector.shape_cast %124 : vector<8x1xf32> to vector<1x8x1xf32>
    tpu.vector_store %arg7[%c3_90, %c0_91, %c0_92], %152 {strides = array<i32>} : memref<4x8x1xf32, #tpu.memory_space<vmem>>, vector<1x8x1xf32>,
    %c0_i32_93 = arith.constant 0 : i32
    %153 = arith.cmpi eq, %arg2, %c0_i32_93 : i32
    %154 = arith.extui %153 : i1 to i32
    %c0_i32_94 = arith.constant 0 : i32
    %155 = arith.cmpi ne, %154, %c0_i32_94 : i32
    scf.if %155 {
      %c0_95 = arith.constant 0 : index
      %c0_96 = arith.constant 0 : index
      %c0_97 = arith.constant 0 : index
      %156 = vector.load %arg8[%c0_95, %c0_96, %c0_97] : memref<4x8x1xf32, #tpu.memory_space<vmem>>, vector<1x8x1xf32>
      %157 = vector.shape_cast %156 : vector<1x8x1xf32> to vector<8x1xf32>
      %158 = tpu.reciprocal %157 {approx = true} : vector<8x1xf32> -> vector<8x1xf32>
      %c0_98 = arith.constant 0 : index
      %c0_99 = arith.constant 0 : index
      %c0_100 = arith.constant 0 : index
      %159 = vector.load %arg9[%c0_98, %c0_99, %c0_100] : memref<4x8x8xf32, #tpu.memory_space<vmem>>, vector<1x8x8xf32>
      %160 = vector.shape_cast %159 : vector<1x8x8xf32> to vector<8x8xf32>
      %161 = vector.broadcast %158 : vector<8x1xf32> to vector<8x8xf32>
      %162 = arith.mulf %160, %161 : vector<8x8xf32>
      %163 = arith.truncf %162 : vector<8x8xf32> to vector<8x8xbf16>
      %c0_101 = arith.constant 0 : index
      %c0_102 = arith.constant 0 : index
      %c0_103 = arith.constant 0 : index
      %164 = vector.load %arg6[%c0_101, %c0_102, %c0_103] : memref<1x8x32xbf16, #tpu.memory_space<vmem>>, vector<1x8x8xbf16>
      %165 = vector.shape_cast %164 : vector<1x8x8xbf16> to vector<8x8xbf16>
      %166 = vector.shape_cast %163 : vector<8x8xbf16> to vector<1x8x8xbf16>
      tpu.vector_store %arg6[%c0_101, %c0_102, %c0_103], %166 {strides = array<i32>} : memref<1x8x32xbf16, #tpu.memory_space<vmem>>, vector<1x8x8xbf16>,
      %c1_104 = arith.constant 1 : index
      %c0_105 = arith.constant 0 : index
      %c0_106 = arith.constant 0 : index
      %167 = vector.load %arg8[%c1_104, %c0_105, %c0_106] : memref<4x8x1xf32, #tpu.memory_space<vmem>>, vector<1x8x1xf32>
      %168 = vector.shape_cast %167 : vector<1x8x1xf32> to vector<8x1xf32>
      %169 = tpu.reciprocal %168 {approx = true} : vector<8x1xf32> -> vector<8x1xf32>
      %c1_107 = arith.constant 1 : index
      %c0_108 = arith.constant 0 : index
      %c0_109 = arith.constant 0 : index
      %170 = vector.load %arg9[%c1_107, %c0_108, %c0_109] : memref<4x8x8xf32, #tpu.memory_space<vmem>>, vector<1x8x8xf32>
      %171 = vector.shape_cast %170 : vector<1x8x8xf32> to vector<8x8xf32>
      %172 = vector.broadcast %169 : vector<8x1xf32> to vector<8x8xf32>
      %173 = arith.mulf %171, %172 : vector<8x8xf32>
      %174 = arith.truncf %173 : vector<8x8xf32> to vector<8x8xbf16>
      %c0_110 = arith.constant 0 : index
      %c0_111 = arith.constant 0 : index
      %c8 = arith.constant 8 : index
      %175 = vector.load %arg6[%c0_110, %c0_111, %c8] : memref<1x8x32xbf16, #tpu.memory_space<vmem>>, vector<1x8x8xbf16>
      %176 = vector.shape_cast %175 : vector<1x8x8xbf16> to vector<8x8xbf16>
      %177 = vector.shape_cast %174 : vector<8x8xbf16> to vector<1x8x8xbf16>
      tpu.vector_store %arg6[%c0_110, %c0_111, %c8], %177 {strides = array<i32>} : memref<1x8x32xbf16, #tpu.memory_space<vmem>>, vector<1x8x8xbf16>,
      %c2_112 = arith.constant 2 : index
      %c0_113 = arith.constant 0 : index
      %c0_114 = arith.constant 0 : index
      %178 = vector.load %arg8[%c2_112, %c0_113, %c0_114] : memref<4x8x1xf32, #tpu.memory_space<vmem>>, vector<1x8x1xf32>
      %179 = vector.shape_cast %178 : vector<1x8x1xf32> to vector<8x1xf32>
      %180 = tpu.reciprocal %179 {approx = true} : vector<8x1xf32> -> vector<8x1xf32>
      %c2_115 = arith.constant 2 : index
      %c0_116 = arith.constant 0 : index
      %c0_117 = arith.constant 0 : index
      %181 = vector.load %arg9[%c2_115, %c0_116, %c0_117] : memref<4x8x8xf32, #tpu.memory_space<vmem>>, vector<1x8x8xf32>
      %182 = vector.shape_cast %181 : vector<1x8x8xf32> to vector<8x8xf32>
      %183 = vector.broadcast %180 : vector<8x1xf32> to vector<8x8xf32>
      %184 = arith.mulf %182, %183 : vector<8x8xf32>
      %185 = arith.truncf %184 : vector<8x8xf32> to vector<8x8xbf16>
      %c0_118 = arith.constant 0 : index
      %c0_119 = arith.constant 0 : index
      %c16 = arith.constant 16 : index
      %186 = vector.load %arg6[%c0_118, %c0_119, %c16] : memref<1x8x32xbf16, #tpu.memory_space<vmem>>, vector<1x8x8xbf16>
      %187 = vector.shape_cast %186 : vector<1x8x8xbf16> to vector<8x8xbf16>
      %188 = vector.shape_cast %185 : vector<8x8xbf16> to vector<1x8x8xbf16>
      tpu.vector_store %arg6[%c0_118, %c0_119, %c16], %188 {strides = array<i32>} : memref<1x8x32xbf16, #tpu.memory_space<vmem>>, vector<1x8x8xbf16>,
      %c3_120 = arith.constant 3 : index
      %c0_121 = arith.constant 0 : index
      %c0_122 = arith.constant 0 : index
      %189 = vector.load %arg8[%c3_120, %c0_121, %c0_122] : memref<4x8x1xf32, #tpu.memory_space<vmem>>, vector<1x8x1xf32>
      %190 = vector.shape_cast %189 : vector<1x8x1xf32> to vector<8x1xf32>
      %191 = tpu.reciprocal %190 {approx = true} : vector<8x1xf32> -> vector<8x1xf32>
      %c3_123 = arith.constant 3 : index
      %c0_124 = arith.constant 0 : index
      %c0_125 = arith.constant 0 : index
      %192 = vector.load %arg9[%c3_123, %c0_124, %c0_125] : memref<4x8x8xf32, #tpu.memory_space<vmem>>, vector<1x8x8xf32>
      %193 = vector.shape_cast %192 : vector<1x8x8xf32> to vector<8x8xf32>
      %194 = vector.broadcast %191 : vector<8x1xf32> to vector<8x8xf32>
      %195 = arith.mulf %193, %194 : vector<8x8xf32>
      %196 = arith.truncf %195 : vector<8x8xf32> to vector<8x8xbf16>
      %c0_126 = arith.constant 0 : index
      %c0_127 = arith.constant 0 : index
      %c24 = arith.constant 24 : index
      %197 = vector.load %arg6[%c0_126, %c0_127, %c24] : memref<1x8x32xbf16, #tpu.memory_space<vmem>>, vector<1x8x8xbf16>
      %198 = vector.shape_cast %197 : vector<1x8x8xbf16> to vector<8x8xbf16>
      %199 = vector.shape_cast %196 : vector<8x8xbf16> to vector<1x8x8xbf16>
      tpu.vector_store %arg6[%c0_126, %c0_127, %c24], %199 {strides = array<i32>} : memref<1x8x32xbf16, #tpu.memory_space<vmem>>, vector<1x8x8xbf16>,
    } else {
    }
    return
  }
  func.func @transform_0(%arg0: i32, %arg1: i32, %arg2: i32) -> (i32, i32, i32) {
    %c0_i32 = arith.constant 0 : i32
    %c0_i32_0 = arith.constant 0 : i32
    return %arg0, %arg1, %c0_i32 : i32, i32, i32
  }
  func.func @transform_1(%arg0: i32, %arg1: i32, %arg2: i32) -> (i32, i32, i32) {
    %c0_i32 = arith.constant 0 : i32
    %c0_i32_0 = arith.constant 0 : i32
    return %arg0, %arg2, %c0_i32 : i32, i32, i32
  }
  func.func @transform_2(%arg0: i32, %arg1: i32, %arg2: i32) -> (i32, i32, i32) {
    %c0_i32 = arith.constant 0 : i32
    %c0_i32_0 = arith.constant 0 : i32
    return %arg0, %arg2, %c0_i32 : i32, i32, i32
  }
  func.func @transform_3(%arg0: i32, %arg1: i32, %arg2: i32) -> (i32, i32, i32) {
    %c0_i32 = arith.constant 0 : i32
    %c0_i32_0 = arith.constant 0 : i32
    return %arg0, %arg1, %c0_i32 : i32, i32, i32
  }
}

module attributes {stable_mosaic.version = 11 : i64} {
  func.func @_linear_bias_res_kernel(%arg0: i32, %arg1: i32, %arg2: i32, %arg3: memref<8x32xbf16, #tpu.memory_space<vmem>>, %arg4: memref<32x32xbf16, #tpu.memory_space<vmem>>, %arg5: memref<1x32xf32, #tpu.memory_space<vmem>>, %arg6: memref<8x32xbf16, #tpu.memory_space<vmem>>, %arg7: memref<8x32xbf16, #tpu.memory_space<vmem>>, %arg8: memref<8x32xf32, #tpu.memory_space<vmem>>) attributes {dimension_semantics = [#tpu.dimension_semantics<parallel>, #tpu.dimension_semantics<parallel>, #tpu.dimension_semantics<arbitrary>], iteration_bounds = array<i64: 2, 1, 1>, scalar_prefetch = 0 : i64, scratch_operands = 1 : i64, tpu.core_type = #tpu.core_type<tc>, window_params = [{transform_indices = @transform_0, window_bounds = array<i64: 8, 32>}, {transform_indices = @transform_1, window_bounds = array<i64: 32, 32>}, {transform_indices = @transform_2, window_bounds = array<i64: 1, 32>}, {transform_indices = @transform_3, window_bounds = array<i64: 8, 32>}, {transform_indices = @transform_4, window_bounds = array<i64: 8, 32>}]} {
    %c0_i32 = arith.constant 0 : i32
    %0 = arith.cmpi eq, %arg2, %c0_i32 : i32
    %1 = arith.extui %0 : i1 to i32
    %c0_i32_0 = arith.constant 0 : i32
    %2 = arith.cmpi ne, %1, %c0_i32_0 : i32
    scf.if %2 {
      %cst_10 = arith.constant 0.000000e+00 : f32
      %12 = vector.broadcast %cst_10 : f32 to vector<8x32xf32>
      %c0_11 = arith.constant 0 : index
      %c0_12 = arith.constant 0 : index
      %13 = vector.load %arg8[%c0_11, %c0_12] : memref<8x32xf32, #tpu.memory_space<vmem>>, vector<8x32xf32>
      tpu.vector_store %arg8[%c0_11, %c0_12], %12 {strides = array<i32>} : memref<8x32xf32, #tpu.memory_space<vmem>>, vector<8x32xf32>,
    } else {
    }
    %c0 = arith.constant 0 : index
    %c0_1 = arith.constant 0 : index
    %3 = vector.load %arg8[%c0, %c0_1] : memref<8x32xf32, #tpu.memory_space<vmem>>, vector<8x32xf32>
    %c0_2 = arith.constant 0 : index
    %c0_3 = arith.constant 0 : index
    %4 = vector.load %arg3[%c0_2, %c0_3] : memref<8x32xbf16, #tpu.memory_space<vmem>>, vector<8x32xbf16>
    %c0_4 = arith.constant 0 : index
    %c0_5 = arith.constant 0 : index
    %5 = vector.load %arg4[%c0_4, %c0_5] : memref<32x32xbf16, #tpu.memory_space<vmem>>, vector<32x32xbf16>
    %cst = arith.constant dense<0.000000e+00> : vector<8x32xf32>
    %6 = tpu.matmul %4, %5, %cst {dimension_numbers = #tpu.dot_dimension_numbers<[1], [0], [0], [1], [0, 0, 1, 1], [], []>} : vector<8x32xbf16>, vector<32x32xbf16>, vector<8x32xf32> -> vector<8x32xf32>
    %7 = arith.addf %3, %6 : vector<8x32xf32>
    %c0_6 = arith.constant 0 : index
    %c0_7 = arith.constant 0 : index
    %8 = vector.load %arg8[%c0_6, %c0_7] : memref<8x32xf32, #tpu.memory_space<vmem>>, vector<8x32xf32>
    tpu.vector_store %arg8[%c0_6, %c0_7], %7 {strides = array<i32>} : memref<8x32xf32, #tpu.memory_space<vmem>>, vector<8x32xf32>,
    %c0_i32_8 = arith.constant 0 : i32
    %9 = arith.cmpi eq, %arg2, %c0_i32_8 : i32
    %10 = arith.extui %9 : i1 to i32
    %c0_i32_9 = arith.constant 0 : i32
    %11 = arith.cmpi ne, %10, %c0_i32_9 : i32
    scf.if %11 {
      %c0_10 = arith.constant 0 : index
      %c0_11 = arith.constant 0 : index
      %12 = vector.load %arg8[%c0_10, %c0_11] : memref<8x32xf32, #tpu.memory_space<vmem>>, vector<8x32xf32>
      %c0_12 = arith.constant 0 : index
      %c0_13 = arith.constant 0 : index
      %13 = vector.load %arg5[%c0_12, %c0_13] : memref<1x32xf32, #tpu.memory_space<vmem>>, vector<1x32xf32>
      %14 = vector.broadcast %13 : vector<1x32xf32> to vector<8x32xf32>
      %15 = arith.addf %12, %14 : vector<8x32xf32>
      %c0_14 = arith.constant 0 : index
      %c0_15 = arith.constant 0 : index
      %16 = vector.load %arg6[%c0_14, %c0_15] : memref<8x32xbf16, #tpu.memory_space<vmem>>, vector<8x32xbf16>
      %17 = arith.extf %16 : vector<8x32xbf16> to vector<8x32xf32>
      %18 = arith.addf %15, %17 : vector<8x32xf32>
      %19 = arith.truncf %18 : vector<8x32xf32> to vector<8x32xbf16>
      %c0_16 = arith.constant 0 : index
      %c0_17 = arith.constant 0 : index
      %20 = vector.load %arg7[%c0_16, %c0_17] : memref<8x32xbf16, #tpu.memory_space<vmem>>, vector<8x32xbf16>
      tpu.vector_store %arg7[%c0_16, %c0_17], %19 {strides = array<i32>} : memref<8x32xbf16, #tpu.memory_space<vmem>>, vector<8x32xbf16>,
    } else {
    }
    return
  }
  func.func @transform_0(%arg0: i32, %arg1: i32, %arg2: i32) -> (i32, i32) {
    %c0_i32 = arith.constant 0 : i32
    return %arg0, %arg2 : i32, i32
  }
  func.func @transform_1(%arg0: i32, %arg1: i32, %arg2: i32) -> (i32, i32) {
    %c0_i32 = arith.constant 0 : i32
    return %arg2, %arg1 : i32, i32
  }
  func.func @transform_2(%arg0: i32, %arg1: i32, %arg2: i32) -> (i32, i32) {
    %c0_i32 = arith.constant 0 : i32
    %c0_i32_0 = arith.constant 0 : i32
    return %c0_i32, %arg1 : i32, i32
  }
  func.func @transform_3(%arg0: i32, %arg1: i32, %arg2: i32) -> (i32, i32) {
    %c2_i32 = arith.constant 2 : i32
    %c0_i32 = arith.constant 0 : i32
    %0 = arith.cmpi eq, %c2_i32, %c0_i32 : i32
    %c1_i32 = arith.constant 1 : i32
    %1 = arith.select %0, %c1_i32, %c2_i32 : i32
    %2 = arith.remsi %arg0, %1 : i32
    %c0_i32_0 = arith.constant 0 : i32
    %3 = arith.cmpi ne, %2, %c0_i32_0 : i32
    %c0_i32_1 = arith.constant 0 : i32
    %4 = arith.cmpi slt, %2, %c0_i32_1 : i32
    %c0_i32_2 = arith.constant 0 : i32
    %5 = arith.cmpi slt, %1, %c0_i32_2 : i32
    %6 = arith.xori %4, %5 : i1
    %7 = arith.andi %6, %3 : i1
    %8 = arith.addi %2, %1 : i32
    %9 = arith.select %7, %8, %2 : i32
    %c0_i32_3 = arith.constant 0 : i32
    return %9, %arg1 : i32, i32
  }
  func.func @transform_4(%arg0: i32, %arg1: i32, %arg2: i32) -> (i32, i32) {
    %c0_i32 = arith.constant 0 : i32
    return %arg0, %arg1 : i32, i32
  }
}

module attributes {stable_mosaic.version = 11 : i64} {
  func.func @_linear_bias_res_kernel(%arg0: i32, %arg1: i32, %arg2: i32, %arg3: memref<8x64xbf16, #tpu.memory_space<vmem>>, %arg4: memref<64x32xbf16, #tpu.memory_space<vmem>>, %arg5: memref<1x32xf32, #tpu.memory_space<vmem>>, %arg6: memref<8x32xbf16, #tpu.memory_space<vmem>>, %arg7: memref<8x32xbf16, #tpu.memory_space<vmem>>, %arg8: memref<8x32xf32, #tpu.memory_space<vmem>>) attributes {dimension_semantics = [#tpu.dimension_semantics<parallel>, #tpu.dimension_semantics<parallel>, #tpu.dimension_semantics<arbitrary>], iteration_bounds = array<i64: 2, 1, 1>, scalar_prefetch = 0 : i64, scratch_operands = 1 : i64, tpu.core_type = #tpu.core_type<tc>, window_params = [{transform_indices = @transform_0, window_bounds = array<i64: 8, 64>}, {transform_indices = @transform_1, window_bounds = array<i64: 64, 32>}, {transform_indices = @transform_2, window_bounds = array<i64: 1, 32>}, {transform_indices = @transform_3, window_bounds = array<i64: 8, 32>}, {transform_indices = @transform_4, window_bounds = array<i64: 8, 32>}]} {
    %c0_i32 = arith.constant 0 : i32
    %0 = arith.cmpi eq, %arg2, %c0_i32 : i32
    %1 = arith.extui %0 : i1 to i32
    %c0_i32_0 = arith.constant 0 : i32
    %2 = arith.cmpi ne, %1, %c0_i32_0 : i32
    scf.if %2 {
      %cst_10 = arith.constant 0.000000e+00 : f32
      %12 = vector.broadcast %cst_10 : f32 to vector<8x32xf32>
      %c0_11 = arith.constant 0 : index
      %c0_12 = arith.constant 0 : index
      %13 = vector.load %arg8[%c0_11, %c0_12] : memref<8x32xf32, #tpu.memory_space<vmem>>, vector<8x32xf32>
      tpu.vector_store %arg8[%c0_11, %c0_12], %12 {strides = array<i32>} : memref<8x32xf32, #tpu.memory_space<vmem>>, vector<8x32xf32>,
    } else {
    }
    %c0 = arith.constant 0 : index
    %c0_1 = arith.constant 0 : index
    %3 = vector.load %arg8[%c0, %c0_1] : memref<8x32xf32, #tpu.memory_space<vmem>>, vector<8x32xf32>
    %c0_2 = arith.constant 0 : index
    %c0_3 = arith.constant 0 : index
    %4 = vector.load %arg3[%c0_2, %c0_3] : memref<8x64xbf16, #tpu.memory_space<vmem>>, vector<8x64xbf16>
    %c0_4 = arith.constant 0 : index
    %c0_5 = arith.constant 0 : index
    %5 = vector.load %arg4[%c0_4, %c0_5] : memref<64x32xbf16, #tpu.memory_space<vmem>>, vector<64x32xbf16>
    %cst = arith.constant dense<0.000000e+00> : vector<8x32xf32>
    %6 = tpu.matmul %4, %5, %cst {dimension_numbers = #tpu.dot_dimension_numbers<[1], [0], [0], [1], [0, 0, 1, 1], [], []>} : vector<8x64xbf16>, vector<64x32xbf16>, vector<8x32xf32> -> vector<8x32xf32>
    %7 = arith.addf %3, %6 : vector<8x32xf32>
    %c0_6 = arith.constant 0 : index
    %c0_7 = arith.constant 0 : index
    %8 = vector.load %arg8[%c0_6, %c0_7] : memref<8x32xf32, #tpu.memory_space<vmem>>, vector<8x32xf32>
    tpu.vector_store %arg8[%c0_6, %c0_7], %7 {strides = array<i32>} : memref<8x32xf32, #tpu.memory_space<vmem>>, vector<8x32xf32>,
    %c0_i32_8 = arith.constant 0 : i32
    %9 = arith.cmpi eq, %arg2, %c0_i32_8 : i32
    %10 = arith.extui %9 : i1 to i32
    %c0_i32_9 = arith.constant 0 : i32
    %11 = arith.cmpi ne, %10, %c0_i32_9 : i32
    scf.if %11 {
      %c0_10 = arith.constant 0 : index
      %c0_11 = arith.constant 0 : index
      %12 = vector.load %arg8[%c0_10, %c0_11] : memref<8x32xf32, #tpu.memory_space<vmem>>, vector<8x32xf32>
      %c0_12 = arith.constant 0 : index
      %c0_13 = arith.constant 0 : index
      %13 = vector.load %arg5[%c0_12, %c0_13] : memref<1x32xf32, #tpu.memory_space<vmem>>, vector<1x32xf32>
      %14 = vector.broadcast %13 : vector<1x32xf32> to vector<8x32xf32>
      %15 = arith.addf %12, %14 : vector<8x32xf32>
      %c0_14 = arith.constant 0 : index
      %c0_15 = arith.constant 0 : index
      %16 = vector.load %arg6[%c0_14, %c0_15] : memref<8x32xbf16, #tpu.memory_space<vmem>>, vector<8x32xbf16>
      %17 = arith.extf %16 : vector<8x32xbf16> to vector<8x32xf32>
      %18 = arith.addf %15, %17 : vector<8x32xf32>
      %19 = arith.truncf %18 : vector<8x32xf32> to vector<8x32xbf16>
      %c0_16 = arith.constant 0 : index
      %c0_17 = arith.constant 0 : index
      %20 = vector.load %arg7[%c0_16, %c0_17] : memref<8x32xbf16, #tpu.memory_space<vmem>>, vector<8x32xbf16>
      tpu.vector_store %arg7[%c0_16, %c0_17], %19 {strides = array<i32>} : memref<8x32xbf16, #tpu.memory_space<vmem>>, vector<8x32xbf16>,
    } else {
    }
    return
  }
  func.func @transform_0(%arg0: i32, %arg1: i32, %arg2: i32) -> (i32, i32) {
    %c0_i32 = arith.constant 0 : i32
    return %arg0, %arg2 : i32, i32
  }
  func.func @transform_1(%arg0: i32, %arg1: i32, %arg2: i32) -> (i32, i32) {
    %c0_i32 = arith.constant 0 : i32
    return %arg2, %arg1 : i32, i32
  }
  func.func @transform_2(%arg0: i32, %arg1: i32, %arg2: i32) -> (i32, i32) {
    %c0_i32 = arith.constant 0 : i32
    %c0_i32_0 = arith.constant 0 : i32
    return %c0_i32, %arg1 : i32, i32
  }
  func.func @transform_3(%arg0: i32, %arg1: i32, %arg2: i32) -> (i32, i32) {
    %c2_i32 = arith.constant 2 : i32
    %c0_i32 = arith.constant 0 : i32
    %0 = arith.cmpi eq, %c2_i32, %c0_i32 : i32
    %c1_i32 = arith.constant 1 : i32
    %1 = arith.select %0, %c1_i32, %c2_i32 : i32
    %2 = arith.remsi %arg0, %1 : i32
    %c0_i32_0 = arith.constant 0 : i32
    %3 = arith.cmpi ne, %2, %c0_i32_0 : i32
    %c0_i32_1 = arith.constant 0 : i32
    %4 = arith.cmpi slt, %2, %c0_i32_1 : i32
    %c0_i32_2 = arith.constant 0 : i32
    %5 = arith.cmpi slt, %1, %c0_i32_2 : i32
    %6 = arith.xori %4, %5 : i1
    %7 = arith.andi %6, %3 : i1
    %8 = arith.addi %2, %1 : i32
    %9 = arith.select %7, %8, %2 : i32
    %c0_i32_3 = arith.constant 0 : i32
    return %9, %arg1 : i32, i32
  }
  func.func @transform_4(%arg0: i32, %arg1: i32, %arg2: i32) -> (i32, i32) {
    %c0_i32 = arith.constant 0 : i32
    return %arg0, %arg1 : i32, i32
  }
}

module attributes {stable_mosaic.version = 11 : i64} {
  func.func @_pooled_head_kernel(%arg0: memref<2x8x32xbf16, #tpu.memory_space<vmem>>, %arg1: memref<1x32xf32, #tpu.memory_space<vmem>>, %arg2: memref<1x32xf32, #tpu.memory_space<vmem>>, %arg3: memref<32x16xf32, #tpu.memory_space<vmem>>, %arg4: memref<1x16xf32, #tpu.memory_space<vmem>>, %arg5: memref<2x16xf32, #tpu.memory_space<vmem>>) attributes {dimension_semantics = [], scalar_prefetch = 0 : i64, scratch_operands = 0 : i64, tpu.core_type = #tpu.core_type<tc>} {
    %c0 = arith.constant 0 : index
    %c0_0 = arith.constant 0 : index
    %c0_1 = arith.constant 0 : index
    %0 = vector.load %arg0[%c0, %c0_0, %c0_1] : memref<2x8x32xbf16, #tpu.memory_space<vmem>>, vector<2x8x32xbf16>
    %1 = arith.extf %0 : vector<2x8x32xbf16> to vector<2x8x32xf32>
    %cst = arith.constant dense<0.000000e+00> : vector<2x32xf32>
    %2 = vector.multi_reduction <add>, %1, %cst [1] : vector<2x8x32xf32> to vector<2x32xf32>
    %cst_2 = arith.constant 8.000000e+00 : f32
    %3 = vector.broadcast %cst_2 : f32 to vector<2x32xf32>
    %4 = arith.divf %2, %3 : vector<2x32xf32>
    %cst_3 = arith.constant dense<0.000000e+00> : vector<2xf32>
    %5 = vector.multi_reduction <add>, %4, %cst_3 [1] : vector<2x32xf32> to vector<2xf32>
    %6 = vector.shape_cast %5 : vector<2xf32> to vector<2x1xf32>
    %cst_4 = arith.constant 3.200000e+01 : f32
    %7 = vector.broadcast %cst_4 : f32 to vector<2x1xf32>
    %8 = arith.divf %6, %7 : vector<2x1xf32>
    %9 = vector.broadcast %8 : vector<2x1xf32> to vector<2x32xf32>
    %10 = arith.subf %4, %9 : vector<2x32xf32>
    %11 = arith.mulf %10, %10 : vector<2x32xf32>
    %cst_5 = arith.constant dense<0.000000e+00> : vector<2xf32>
    %12 = vector.multi_reduction <add>, %11, %cst_5 [1] : vector<2x32xf32> to vector<2xf32>
    %13 = vector.shape_cast %12 : vector<2xf32> to vector<2x1xf32>
    %cst_6 = arith.constant 3.200000e+01 : f32
    %14 = vector.broadcast %cst_6 : f32 to vector<2x1xf32>
    %15 = arith.divf %13, %14 : vector<2x1xf32>
    %cst_7 = arith.constant 9.99999996E-13 : f32
    %16 = vector.broadcast %cst_7 : f32 to vector<2x1xf32>
    %17 = arith.addf %15, %16 : vector<2x1xf32>
    %18 = math.rsqrt %17 : vector<2x1xf32>
    %19 = vector.broadcast %18 : vector<2x1xf32> to vector<2x32xf32>
    %20 = arith.mulf %10, %19 : vector<2x32xf32>
    %c0_8 = arith.constant 0 : index
    %c0_9 = arith.constant 0 : index
    %21 = vector.load %arg1[%c0_8, %c0_9] : memref<1x32xf32, #tpu.memory_space<vmem>>, vector<1x32xf32>
    %22 = vector.broadcast %21 : vector<1x32xf32> to vector<2x32xf32>
    %23 = arith.mulf %20, %22 : vector<2x32xf32>
    %c0_10 = arith.constant 0 : index
    %c0_11 = arith.constant 0 : index
    %24 = vector.load %arg2[%c0_10, %c0_11] : memref<1x32xf32, #tpu.memory_space<vmem>>, vector<1x32xf32>
    %25 = vector.broadcast %24 : vector<1x32xf32> to vector<2x32xf32>
    %26 = arith.addf %23, %25 : vector<2x32xf32>
    %c0_12 = arith.constant 0 : index
    %c0_13 = arith.constant 0 : index
    %27 = vector.load %arg3[%c0_12, %c0_13] : memref<32x16xf32, #tpu.memory_space<vmem>>, vector<32x16xf32>
    %cst_14 = arith.constant dense<0.000000e+00> : vector<2x16xf32>
    %28 = tpu.matmul %26, %27, %cst_14 {dimension_numbers = #tpu.dot_dimension_numbers<[1], [0], [0], [1], [0, 0, 1, 1], [], []>} : vector<2x32xf32>, vector<32x16xf32>, vector<2x16xf32> -> vector<2x16xf32>
    %c0_15 = arith.constant 0 : index
    %c0_16 = arith.constant 0 : index
    %29 = vector.load %arg4[%c0_15, %c0_16] : memref<1x16xf32, #tpu.memory_space<vmem>>, vector<1x16xf32>
    %30 = vector.broadcast %29 : vector<1x16xf32> to vector<2x16xf32>
    %31 = arith.addf %28, %30 : vector<2x16xf32>
    %c0_17 = arith.constant 0 : index
    %c0_18 = arith.constant 0 : index
    %32 = vector.load %arg5[%c0_17, %c0_18] : memref<2x16xf32, #tpu.memory_space<vmem>>, vector<2x16xf32>
    tpu.vector_store %arg5[%c0_17, %c0_18], %31 {strides = array<i32>} : memref<2x16xf32, #tpu.memory_space<vmem>>, vector<2x16xf32>,
    return
  }
}

module attributes {stable_mosaic.version = 11 : i64} {
  func.func @_ln_linear_kernel(%arg0: i32, %arg1: i32, %arg2: memref<8x32xbf16, #tpu.memory_space<vmem>>, %arg3: memref<1x32xf32, #tpu.memory_space<vmem>>, %arg4: memref<1x32xf32, #tpu.memory_space<vmem>>, %arg5: memref<32x64xbf16, #tpu.memory_space<vmem>>, %arg6: memref<1x64xf32, #tpu.memory_space<vmem>>, %arg7: memref<8x64xbf16, #tpu.memory_space<vmem>>, %arg8: memref<8x32xbf16, #tpu.memory_space<vmem>>) attributes {dimension_semantics = [#tpu.dimension_semantics<parallel>, #tpu.dimension_semantics<arbitrary>], iteration_bounds = array<i64: 2, 1>, scalar_prefetch = 0 : i64, scratch_operands = 1 : i64, tpu.core_type = #tpu.core_type<tc>, window_params = [{transform_indices = @transform_0, window_bounds = array<i64: 8, 32>}, {pipeline_mode = #tpu.pipeline_mode<synchronous>, transform_indices = @transform_1, window_bounds = array<i64: 1, 32>}, {pipeline_mode = #tpu.pipeline_mode<synchronous>, transform_indices = @transform_2, window_bounds = array<i64: 1, 32>}, {transform_indices = @transform_3, window_bounds = array<i64: 32, 64>}, {transform_indices = @transform_4, window_bounds = array<i64: 1, 64>}, {transform_indices = @transform_5, window_bounds = array<i64: 8, 64>}]} {
    %c0_i32 = arith.constant 0 : i32
    %0 = arith.cmpi eq, %arg1, %c0_i32 : i32
    %1 = arith.extui %0 : i1 to i32
    %c0_i32_0 = arith.constant 0 : i32
    %2 = arith.cmpi ne, %1, %c0_i32_0 : i32
    scf.if %2 {
      %c0_12 = arith.constant 0 : index
      %c0_13 = arith.constant 0 : index
      %24 = vector.load %arg2[%c0_12, %c0_13] : memref<8x32xbf16, #tpu.memory_space<vmem>>, vector<8x32xbf16>
      %25 = arith.extf %24 : vector<8x32xbf16> to vector<8x32xf32>
      %cst_14 = arith.constant dense<0.000000e+00> : vector<8xf32>
      %26 = vector.multi_reduction <add>, %25, %cst_14 [1] : vector<8x32xf32> to vector<8xf32>
      %27 = vector.shape_cast %26 : vector<8xf32> to vector<8x1xf32>
      %cst_15 = arith.constant 3.200000e+01 : f32
      %28 = vector.broadcast %cst_15 : f32 to vector<8x1xf32>
      %29 = arith.divf %27, %28 : vector<8x1xf32>
      %30 = vector.broadcast %29 : vector<8x1xf32> to vector<8x32xf32>
      %31 = arith.subf %25, %30 : vector<8x32xf32>
      %32 = arith.mulf %31, %31 : vector<8x32xf32>
      %cst_16 = arith.constant dense<0.000000e+00> : vector<8xf32>
      %33 = vector.multi_reduction <add>, %32, %cst_16 [1] : vector<8x32xf32> to vector<8xf32>
      %34 = vector.shape_cast %33 : vector<8xf32> to vector<8x1xf32>
      %cst_17 = arith.constant 3.200000e+01 : f32
      %35 = vector.broadcast %cst_17 : f32 to vector<8x1xf32>
      %36 = arith.divf %34, %35 : vector<8x1xf32>
      %cst_18 = arith.constant 9.99999996E-13 : f32
      %37 = vector.broadcast %cst_18 : f32 to vector<8x1xf32>
      %38 = arith.addf %36, %37 : vector<8x1xf32>
      %39 = math.rsqrt %38 : vector<8x1xf32>
      %40 = vector.broadcast %39 : vector<8x1xf32> to vector<8x32xf32>
      %41 = arith.mulf %31, %40 : vector<8x32xf32>
      %c0_19 = arith.constant 0 : index
      %c0_20 = arith.constant 0 : index
      %42 = vector.load %arg3[%c0_19, %c0_20] : memref<1x32xf32, #tpu.memory_space<vmem>>, vector<1x32xf32>
      %43 = vector.broadcast %42 : vector<1x32xf32> to vector<8x32xf32>
      %44 = arith.mulf %41, %43 : vector<8x32xf32>
      %c0_21 = arith.constant 0 : index
      %c0_22 = arith.constant 0 : index
      %45 = vector.load %arg4[%c0_21, %c0_22] : memref<1x32xf32, #tpu.memory_space<vmem>>, vector<1x32xf32>
      %46 = vector.broadcast %45 : vector<1x32xf32> to vector<8x32xf32>
      %47 = arith.addf %44, %46 : vector<8x32xf32>
      %48 = arith.truncf %47 : vector<8x32xf32> to vector<8x32xbf16>
      %c0_23 = arith.constant 0 : index
      %c0_24 = arith.constant 0 : index
      %49 = vector.load %arg8[%c0_23, %c0_24] : memref<8x32xbf16, #tpu.memory_space<vmem>>, vector<8x32xbf16>
      tpu.vector_store %arg8[%c0_23, %c0_24], %48 {strides = array<i32>} : memref<8x32xbf16, #tpu.memory_space<vmem>>, vector<8x32xbf16>,
    } else {
    }
    %c0 = arith.constant 0 : index
    %c0_1 = arith.constant 0 : index
    %3 = vector.load %arg8[%c0, %c0_1] : memref<8x32xbf16, #tpu.memory_space<vmem>>, vector<8x32xbf16>
    %c0_2 = arith.constant 0 : index
    %c0_3 = arith.constant 0 : index
    %4 = vector.load %arg5[%c0_2, %c0_3] : memref<32x64xbf16, #tpu.memory_space<vmem>>, vector<32x64xbf16>
    %cst = arith.constant dense<0.000000e+00> : vector<8x64xf32>
    %5 = tpu.matmul %3, %4, %cst {dimension_numbers = #tpu.dot_dimension_numbers<[1], [0], [0], [1], [0, 0, 1, 1], [], []>} : vector<8x32xbf16>, vector<32x64xbf16>, vector<8x64xf32> -> vector<8x64xf32>
    %c0_4 = arith.constant 0 : index
    %c0_5 = arith.constant 0 : index
    %6 = vector.load %arg6[%c0_4, %c0_5] : memref<1x64xf32, #tpu.memory_space<vmem>>, vector<1x64xf32>
    %7 = vector.broadcast %6 : vector<1x64xf32> to vector<8x64xf32>
    %8 = arith.addf %5, %7 : vector<8x64xf32>
    %cst_6 = arith.constant 5.000000e-01 : f32
    %9 = vector.broadcast %cst_6 : f32 to vector<8x64xf32>
    %10 = arith.mulf %9, %8 : vector<8x64xf32>
    %cst_7 = arith.constant 4.471500e-02 : f32
    %11 = vector.broadcast %cst_7 : f32 to vector<8x64xf32>
    %12 = arith.mulf %11, %8 : vector<8x64xf32>
    %13 = arith.mulf %12, %8 : vector<8x64xf32>
    %14 = arith.mulf %13, %8 : vector<8x64xf32>
    %15 = arith.addf %8, %14 : vector<8x64xf32>
    %cst_8 = arith.constant 0.797884583 : f32
    %16 = vector.broadcast %cst_8 : f32 to vector<8x64xf32>
    %17 = arith.mulf %16, %15 : vector<8x64xf32>
    %18 = math.tanh %17 : vector<8x64xf32>
    %cst_9 = arith.constant 1.000000e+00 : f32
    %19 = vector.broadcast %cst_9 : f32 to vector<8x64xf32>
    %20 = arith.addf %19, %18 : vector<8x64xf32>
    %21 = arith.mulf %10, %20 : vector<8x64xf32>
    %22 = arith.truncf %21 : vector<8x64xf32> to vector<8x64xbf16>
    %c0_10 = arith.constant 0 : index
    %c0_11 = arith.constant 0 : index
    %23 = vector.load %arg7[%c0_10, %c0_11] : memref<8x64xbf16, #tpu.memory_space<vmem>>, vector<8x64xbf16>
    tpu.vector_store %arg7[%c0_10, %c0_11], %22 {strides = array<i32>} : memref<8x64xbf16, #tpu.memory_space<vmem>>, vector<8x64xbf16>,
    return
  }
  func.func @transform_0(%arg0: i32, %arg1: i32) -> (i32, i32) {
    %c0_i32 = arith.constant 0 : i32
    %c0_i32_0 = arith.constant 0 : i32
    return %arg0, %c0_i32 : i32, i32
  }
  func.func @transform_1(%arg0: i32, %arg1: i32) -> (i32, i32) {
    %c0_i32 = arith.constant 0 : i32
    %c0_i32_0 = arith.constant 0 : i32
    %c0_i32_1 = arith.constant 0 : i32
    return %c0_i32, %c0_i32_0 : i32, i32
  }
  func.func @transform_2(%arg0: i32, %arg1: i32) -> (i32, i32) {
    %c0_i32 = arith.constant 0 : i32
    %c0_i32_0 = arith.constant 0 : i32
    %c0_i32_1 = arith.constant 0 : i32
    return %c0_i32, %c0_i32_0 : i32, i32
  }
  func.func @transform_3(%arg0: i32, %arg1: i32) -> (i32, i32) {
    %c0_i32 = arith.constant 0 : i32
    %c0_i32_0 = arith.constant 0 : i32
    return %c0_i32, %arg1 : i32, i32
  }
  func.func @transform_4(%arg0: i32, %arg1: i32) -> (i32, i32) {
    %c0_i32 = arith.constant 0 : i32
    %c0_i32_0 = arith.constant 0 : i32
    return %c0_i32, %arg1 : i32, i32
  }
  func.func @transform_5(%arg0: i32, %arg1: i32) -> (i32, i32) {
    %c0_i32 = arith.constant 0 : i32
    return %arg0, %arg1 : i32, i32
  }
}

</mosaic_0001>

<bundles_post_ra>
// kernel: videomae_feature_forward.13
= control target key start
LH: loop header
LB: loop body
LE: loop exit
PB: predicated region body
PF: predicated region fallthrough
CT: control target
= control target key end

     0   :  { %s713_s24 = smov 0   ;;  %s715_s25 = smov 0   ;;  %s776_s0 = inlined_call_operand.vmem [shape: bf16[2,8,32], index: 0, kind: input, shape index: {}]   ;;  %s777_s1 = inlined_call_operand.vmem [shape: f32[1,32], index: 1, kind: input, shape index: {}]   ;;  %s778_s2 = inlined_call_operand.vmem [shape: f32[1,32], index: 2, kind: input, shape index: {}]   ;;  %s779_s3 = inlined_call_operand.vmem [shape: bf16[32,96], index: 3, kind: input, shape index: {}]   ;;  %s780_s4 = inlined_call_operand.vmem [shape: f32[1,96], index: 4, kind: input, shape index: {}]   ;;  %s781_s5 = inlined_call_operand.vmem [shape: bf16[2,8,32], index: 5, kind: output, shape index: {0}]   ;;  %s782_s6 = inlined_call_operand.vmem [shape: bf16[2,8,32], index: 6, kind: output, shape index: {1}]   ;;  %s783_s7 = inlined_call_operand.vmem [shape: bf16[2,8,32], index: 7, kind: output, shape index: {2}]  }
   0x1   :  { %s717_s26 = smov 0  }
   0x2 LB: > { %s30_s27 = sadd.s32 1, %s664_s25  ;;  %p594_p0 = scmp.ge.s32.totalorder %s668_s26, 1  ;;  %s668_s26 = sphi %s717_s26, %s18_s26   ;;  %s664_s25 = sphi %s715_s25, %s785_s25   ;;  %s660_s24 = sphi %s713_s24, %s784_s24  }
   0x3   : > { %p32_p1 = scmp.ge.s32.totalorder %s30_s27, 2  ;;  %p264_p2 = scmp.lt.s32.totalorder %s668_s26, 3 }
   0x5   : > { %s787_s27 = smov (%p32_p1, %s30_s27), 0  ;;  %p265_p3 = pnand %p594_p0, %p264_p2 }
   0x6   : > { %p314_p4 = scmp.lt.s32.totalorder (!%p265_p3), %s660_s24, 1  ;;  %s671_s22 = smov (!%p265_p3), 96  }
   0x7   : > { %268 = sbr.rel (%p265_p3) target bundleno = 542 (0x21e), region = 40  ;;  %s672_s23 = smov (!%p265_p3), 64  }
   0xc   : > { %s789_s24 = smov (!%p314_p4, %s660_s24), 1  ;;  %vm345_vm0 = vcmask 261120   ;;  %v670_v3 = vmov 32.0   ;;  %v611_v15 = vld [vmem:[%s779_s3 + $0x8] sm:$0xff]  ;;  %v610_v16 = vld [vmem:[%s779_s3] sm:$0xff]  ;;  %vm423_vm5 = vcmask 257024  }
   0xd   : > { %s731_s28 = sshll.u32 %s789_s24, 2  ;;  %642 = vrcp.f32 %v670_v3  ;;  %415 = vmatpush.bf16.msra.mxu0 %v611_v15  ;;  %v639_v26 = vld [vmem:[%s777_s1] ss:$0 sm:$0xff] }
   0xe   : > { %s320_s8 = scalar_lea.vmem %s776_s0, %s731_s28  ;;  %v640_v29 = vld [vmem:[%s778_s2] ss:$0 sm:$0xff]  ;;  %s327_s21 = scalar_lea.vmem %s781_s5, %s731_s28 }
   0xf   : > { %v343_v0 = vld [vmem:[%s320_s8] sm:$0xf]  ;;  %s334_s30 = scalar_lea.vmem %s782_s6, %s731_s28  ;;  %s341_s10 = scalar_lea.vmem %s783_s7, %s731_s28 }
  0x10   : > { %v344_v1 = vunpack.c.l.bf16 %v343_v0  ;;  %v641_v33 = vld [vmem:[%s780_s4] ss:$0 sm:$0xff] }
  0x11   : > { %416 = vmatpush.bf16.msra.mxu0 %v610_v16 }
  0x12   : > { %v346_v2 = vsel %vm345_vm0, %v344_v1, 0.0 }
  0x13   : > { %347 = vadd.xlane.f32.xlu0 %v346_v2  ;;  %v643_v4 = vpop.eup %642 }
  0x14   : > { %v350_v5 = vmul.f32 32.0, %v643_v4  ;;  %vm354_vm1 = vweird.f32 %v643_v4 }
  0x16   : > { %v351_v6 = vsub.f32 1.0, %v350_v5 }
  0x18   : > { %v352_v7 = vmul.f32 %v643_v4, %v351_v6 }
  0x1a   : > { %v353_v8 = vadd.f32 %v643_v4, %v352_v7 }
  0x1c   : > { %v355_v9 = vsel %vm354_vm1, %v643_v4, %v353_v8 }
  0x86   : > { %v348_v10 = vpop.xlane.xlu0 %347 }
  0x87   : > { %v356_v11 = vmul.f32 %v355_v9, %v348_v10 }
  0x89   : > { %v357_v12 = vsub.f32 %v344_v1, %v356_v11 }
  0x8b   : > { %v358_v13 = vmul.f32 %v357_v12, %v357_v12 }
  0x8d   : > { %v359_v14 = vsel %vm345_vm0, %v358_v13, 0.0 }
  0x8e   : > { %360 = vadd.xlane.f32.xlu0 %v359_v14 }
 0x101   : > { %v361_v17 = vpop.xlane.xlu0 %360 }
 0x102   : > { %v362_v18 = vmul.f32 %v361_v17, %v355_v9 }
 0x104   : > { %v363_v19 = vadd.f32 1e-12, %v362_v18 }
 0x106   : > { %644 = vrsqrt.f32 %v363_v19  ;;  %vm370_vm3 = vweird.f32 %v363_v19 }
 0x10c   : > { %v645_v20 = vpop.eup %644 }
 0x10d   : > { %v365_v21 = vmul.f32 %v645_v20, %v363_v19  ;;  %vm371_vm2 = vweird.f32 %v645_v20 }
 0x10e   : > { %vm372_vm4 = vmor %vm370_vm3, %vm371_vm2 }
 0x10f   : > { %v366_v22 = vmul.f32 %v645_v20, %v365_v21 }
 0x111   : > { %v367_v23 = vmul.f32 0.5, %v366_v22 }
 0x113   : > { %v368_v24 = vsub.f32 1.5, %v367_v23 }
 0x115   : > { %v369_v25 = vmul.f32 %v645_v20, %v368_v24 }
 0x117   : > { %v373_v27 = vsel %vm372_vm4, %v645_v20, %v369_v25 }
 0x118   : > { %v374_v28 = vmul.f32 %v373_v27, %v357_v12 }
 0x11a   : > { %v379_v30 = vmul.f32 %v639_v26, %v374_v28 }
 0x11c   : > { %v384_v31 = vadd.f32 %v640_v29, %v379_v30 }
 0x11e   : > { %v385_v32 = vpack.c.bf16 %v384_v31, %v384_v31 }
 0x120   : > { %607 = vmatmul.msk.bf16.vlgmr.msra.gmra.mxu0 %vm345_vm0, %v385_v32 }
 0x19d   : > { %v418_v34 = vpop.f32.mrf.mxu0 }
 0x19e   : > { %v419_v35 = vadd.f32 %v641_v33, %v418_v34 }
 0x1a0   : > { %v422_v36 = vpack.c.bf16 %v419_v35, %v419_v35 }
 0x1a2   : > { %426 = vrot.lane.b32.xlu1 %v422_v36, %s671_s22  ;;  %424 = vst.msk [vmem:[%s327_s21] sm:$0xf] %vm423_vm5, %v422_v36 }
 0x1a5   : > { %v420_v37 = vpop.f32.mrf.mxu0 }
 0x1aa   : > { %430 = vrot.lane.b32.xlu1 %v422_v36, %s672_s23 }
 0x214   : > { %v427_v38 = vpop.permute.xlu1 %426 }
 0x215   : > { %429 = vst.msk [vmem:[%s334_s30] sm:$0xf] %vm423_vm5, %v427_v38 }
 0x21c   : > { %v431_v39 = vpop.permute.xlu1 %430 }
 0x21d   : > { %433 = vst.msk [vmem:[%s341_s10] sm:$0xf] %vm423_vm5, %v431_v39 }
 0x21e PF: > { %s18_s26 = sadd.s32 1, %s668_s26   ;;  %s784_s24 = smov %s664_s25 }
 0x21f   : > { %p15_p5 = scmp.ge.s32.totalorder %s18_s26, 4   ;;  %s785_s25 = smov %s787_s27 }
 0x221   :  { %17 = sbr.rel (!%p15_p5) target bundleno = 2 (0x2), region = 94 }

// kernel: videomae_feature_forward.15
= control target key start
LH: loop header
LB: loop body
LE: loop exit
PB: predicated region body
PF: predicated region fallthrough
CT: control target
= control target key end

     0   :  { %s680_s15 = smov 0   ;;  %s682_s16 = smov 0   ;;  %s742_s0 = inlined_call_operand.vmem [shape: bf16[16,32], index: 0, kind: input, shape index: {}]   ;;  %s743_s1 = inlined_call_operand.vmem [shape: bf16[32,32], index: 1, kind: input, shape index: {}]   ;;  %s744_s2 = inlined_call_operand.vmem [shape: f32[1,32], index: 2, kind: input, shape index: {}]   ;;  %s745_s3 = inlined_call_operand.vmem [shape: bf16[16,32], index: 3, kind: input, shape index: {}]   ;;  %s746_s4 = inlined_call_operand.vmem [shape: bf16[16,32], index: 4, kind: output, shape index: {}]  }
   0x1   :  { %s684_s17 = smov 0  }
   0x2 LB: > { %s33_s18 = sadd.s32 1, %s648_s16  ;;  %p584_p0 = scmp.ge.s32.totalorder %s652_s17, 1  ;;  %s652_s17 = sphi %s684_s17, %s14_s17   ;;  %s648_s16 = sphi %s682_s16, %s748_s16   ;;  %s644_s15 = sphi %s680_s15, %s747_s15  }
   0x3   : > { %p35_p1 = scmp.ge.s32.totalorder %s33_s18, 2  ;;  %p273_p2 = scmp.lt.s32.totalorder %s652_s17, 3 }
   0x5   : > { %s750_s18 = smov (%p35_p1, %s33_s18), 0  ;;  %p274_p3 = pnand %p584_p0, %p273_p2 }
   0x6   : > { %p333_p4 = scmp.lt.s32.totalorder (!%p274_p3), %s644_s15, 1  ;;  %s353_s28 = ssub.s32 (!%p274_p3), 0, %s644_s15 }
   0x7   : > { %277 = sbr.rel (%p274_p3) target bundleno = 163 (0xa3), region = 36  ;;  %s586_s29 = smin.u32 (!%p274_p3), %s644_s15, %s353_s28 }
   0x8   : > { %s355_s30 = sand.u32 (!%p274_p3), 1, %s586_s29   ;;  %p352_p5 = scmp.lt.s32.totalorder (!%p274_p3), %s644_s15, 0 }
   0x9   : > { %s356_s5 = ssub.s32 (!%p274_p3), 0, %s355_s30 }
   0xc   : > { %v603_v0 = vld [vmem:[%s743_s1 + $0x8] sm:$0xff]  ;;  %vm395_vm0 = vcmask 261120   ;;  %v654_v1 = vmov 0.0   ;;  %v602_v2 = vld [vmem:[%s743_s1] sm:$0xff]  ;;  %s709_s23 = scalar_select %p333_p4, %s644_s15, 1  ;;  %vm447_vm1 = vcmask 257024  }
   0xd   : > { %396 = vst.msk [vmem:[#allocation2] sm:$0xff] %vm395_vm0, %v654_v1  ;;  %425 = vmatpush.bf16.msra.mxu0 %v603_v0  ;;  %s752_s5 = smov (!%p352_p5, %s356_s5), %s355_s30  ;;  %v629_v8 = vld [vmem:[%s744_s2] ss:$0 sm:$0xff] }
   0xe   : > { %s585_s24 = sshll.u32 %s709_s23, 2  ;;  %p588_p6 = scmp.lt.s32.totalorder %s752_s5, 0 }
   0xf   : > { %s339_s27 = scalar_lea.vmem %s742_s0, %s585_s24  ;;  %s362_s6 = sadd.s32 2, %s752_s5 }
  0x10   : > { %v398_v3 = vld [vmem:[%s339_s27] sm:$0xf]  ;;  %s754_s6 = smov (!%p588_p6, %s362_s6), %s752_s5  ;;  %s389_s15 = scalar_lea.vmem %s746_s4, %s585_s24 }
  0x11   : > { %426 = vmatpush.bf16.msra.mxu0 %v602_v2  ;;  %p364_p7 = scmp.lt.s32.totalorder %s754_s6, 1 }
  0x13   : > { %s756_s6 = smov (!%p364_p7, %s754_s6), 1 }
  0x14   : > { %599 = vmatmul.msk.bf16.vlgmr.msra.gmra.mxu0 %vm395_vm0, %v398_v3  ;;  %v397_v4 = vld [vmem:[#allocation2] sm:$0xff]  ;;  %s589_s7 = sshll.u32 %s756_s6, 2 }
  0x15   : > { %s370_s10 = scalar_lea.vmem %s745_s3, %s589_s7 }
  0x16   : > { %v443_v7 = vld [vmem:[%s370_s10] sm:$0xf] }
  0x17   : > { %v444_v10 = vunpack.c.l.bf16 %v443_v7 }
  0x91   : > { %v428_v5 = vpop.f32.mrf.mxu0 }
  0x92   : > { %v432_v6 = vadd.f32 %v428_v5, %v397_v4 }
  0x94   : > { %433 = vst.msk [vmem:[#allocation2] sm:$0xff] %vm395_vm0, %v432_v6 }
  0x99   : > { %v430_v9 = vpop.f32.mrf.mxu0 }
  0x9b   : > { %v437_v11 = vld [vmem:[#allocation2] sm:$0xff] }
  0x9c   : > { %v442_v12 = vadd.f32 %v629_v8, %v437_v11 }
  0x9e   : > { %v445_v13 = vadd.f32 %v444_v10, %v442_v12 }
  0xa0   : > { %v446_v14 = vpack.c.bf16 %v445_v13, %v445_v13 }
  0xa2   : > { %448 = vst.msk [vmem:[%s389_s15] sm:$0xf] %vm447_vm1, %v446_v14 }
  0xa3 PF: > { %s14_s17 = sadd.s32 1, %s652_s17   ;;  %s747_s15 = smov %s648_s16 }
  0xa4   : > { %p11_p8 = scmp.ge.s32.totalorder %s14_s17, 4   ;;  %s748_s16 = smov %s750_s18 }
  0xa6   :  { %13 = sbr.rel (!%p11_p8) target bundleno = 2 (0x2), region = 83 }

// kernel: videomae_feature_forward.12
= control target key start
LH: loop header
LB: loop body
LE: loop exit
PB: predicated region body
PF: predicated region fallthrough
CT: control target
= control target key end

     0   :  { %s906_s15 = smov 0   ;;  %s908_s16 = smov 0   ;;  %s1025_s0 = inlined_call_operand.vmem [shape: bf16[16,384], index: 0, kind: input, shape index: {}]   ;;  %s1026_s1 = inlined_call_operand.vmem [shape: bf16[384,32], index: 1, kind: input, shape index: {}]   ;;  %s1027_s2 = inlined_call_operand.vmem [shape: f32[1,32], index: 2, kind: input, shape index: {}]   ;;  %s1028_s3 = inlined_call_operand.vmem [shape: f32[8,32], index: 3, kind: input, shape index: {}]   ;;  %s1029_s4 = inlined_call_operand.vmem [shape: bf16[16,32], index: 4, kind: output, shape index: {}]  }
   0x1   :  { %s910_s17 = smov 0  }
   0x2 LB: > { %s33_s18 = sadd.s32 1, %s874_s16  ;;  %p704_p0 = scmp.ge.s32.totalorder %s878_s17, 1  ;;  %s878_s17 = sphi %s910_s17, %s14_s17   ;;  %s874_s16 = sphi %s908_s16, %s1031_s16   ;;  %s870_s15 = sphi %s906_s15, %s1030_s15  }
   0x3   : > { %p35_p1 = scmp.ge.s32.totalorder %s33_s18, 2  ;;  %p223_p2 = scmp.lt.s32.totalorder %s878_s17, 3 }
   0x5   : > { %s1033_s18 = smov (%p35_p1, %s33_s18), 0  ;;  %p224_p3 = pnand %p704_p0, %p223_p2 }
   0x6   : > { %p271_p4 = scmp.lt.s32.totalorder (!%p224_p3), %s870_s15, 1 }
   0x7   : > { %227 = sbr.rel (%p224_p3) target bundleno = 197 (0xc5), region = 36 }
   0xc   : > { %v812_v0 = vld [vmem:[%s1026_s1 + $0x38] sm:$0xff]  ;;  %v811_v3 = vld [vmem:[%s1026_s1 + $0x30] sm:$0xff]  ;;  %v810_v6 = vld [vmem:[%s1026_s1 + $0x28] sm:$0xff]  ;;  %s1035_s15 = smov (!%p271_p4, %s870_s15), 1  ;;  %vm307_vm0 = vcmask 261120   ;;  %v880_v32 = vmov 0.0  }
   0xd   : > { %v820_v1 = vld [vmem:[%s1026_s1 + $0x78] sm:$0xff]  ;;  %515 = vmatpush.bf16.msra.mxu0 %v812_v0  ;;  %v819_v4 = vld [vmem:[%s1026_s1 + $0x70] sm:$0xff]  ;;  %v818_v7 = vld [vmem:[%s1026_s1 + $0x68] sm:$0xff]  ;;  %s829_s27 = smul.u32 12, %s1035_s15  ;;  %308 = vst.msk [vmem:[#allocation2] sm:$0xff] %vm307_vm0, %v880_v32  ;;  %s706_s5 = sshll.u32 %s1035_s15, 2 }
   0xe   : > { %v828_v2 = vld [vmem:[%s1026_s1 + $0xb8] sm:$0xff]  ;;  %528 = vmatpush.bf16.msra.mxu1 %v820_v1  ;;  %v827_v5 = vld [vmem:[%s1026_s1 + $0xb0] sm:$0xff]  ;;  %v826_v8 = vld [vmem:[%s1026_s1 + $0xa8] sm:$0xff]  ;;  %s302_s8 = scalar_lea.vmem %s1029_s4, %s706_s5  ;;  %vm569_vm1 = vcmask 257024  }
   0xf   : > { %541 = vmatpush.bf16.msra.mxu2 %v828_v2  ;;  %v809_v9 = vld [vmem:[%s1026_s1 + $0x20] sm:$0xff]  ;;  %v808_v12 = vld [vmem:[%s1026_s1 + $0x18] sm:$0xff]  ;;  %v807_v15 = vld [vmem:[%s1026_s1 + $0x10] sm:$0xff]  ;;  %s278_s10 = scalar_lea.vmem %s1025_s0, %s829_s27 }
  0x10   : > { %v817_v10 = vld [vmem:[%s1026_s1 + $0x60] sm:$0xff]  ;;  %v816_v13 = vld [vmem:[%s1026_s1 + $0x58] sm:$0xff]  ;;  %v815_v16 = vld [vmem:[%s1026_s1 + $0x50] sm:$0xff] }
  0x11   : > { %516 = vmatpush.bf16.msra.mxu0 %v811_v3  ;;  %v825_v11 = vld [vmem:[%s1026_s1 + $0xa0] sm:$0xff]  ;;  %v824_v14 = vld [vmem:[%s1026_s1 + $0x98] sm:$0xff]  ;;  %v823_v17 = vld [vmem:[%s1026_s1 + $0x90] sm:$0xff] }
  0x12   : > { %529 = vmatpush.bf16.msra.mxu1 %v819_v4  ;;  %v806_v18 = vld [vmem:[%s1026_s1 + $0x8] sm:$0xff]  ;;  %v310_v20 = vld [vmem:[%s278_s10] sm:$0xff] }
  0x13   : > { %542 = vmatpush.bf16.msra.mxu2 %v827_v5  ;;  %v814_v19 = vld [vmem:[%s1026_s1 + $0x48] sm:$0xff]  ;;  %v362_v23 = vunpack.c.l.b16 %v310_v20  ;;  %v363_v24 = vunpack.c.h.b16 %v310_v20  ;;  %v805_v25 = vld [vmem:[%s1026_s1] sm:$0xff] }
  0x14   : > { %v822_v21 = vld [vmem:[%s1026_s1 + $0x88] sm:$0xff]  ;;  %v813_v26 = vld [vmem:[%s1026_s1 + $0x40] sm:$0xff] }
  0x15   : > { %517 = vmatpush.bf16.msra.mxu0 %v810_v6  ;;  %v311_v22 = vld [vmem:[%s278_s10 + $0x8] sm:$0xf]  ;;  %v821_v28 = vld [vmem:[%s1026_s1 + $0x80] sm:$0xff]  ;;  %v365_v29 = vpack.c.b16 %v362_v23, %v362_v23  ;;  %v366_v30 = vpack.c.b16 %v363_v24, %v363_v24 }
  0x16   : > { %530 = vmatpush.bf16.msra.mxu1 %v818_v7  ;;  %v364_v27 = vunpack.c.l.b16 %v311_v22  ;;  %v309_v36 = vld [vmem:[#allocation2] sm:$0xff] }
  0x17   : > { %543 = vmatpush.bf16.msra.mxu2 %v826_v8  ;;  %v855_v43 = vld [vmem:[%s1027_s2] ss:$0 sm:$0xff] }
  0x18   : > { %v367_v31 = vpack.c.b16 %v364_v27, %v364_v27  ;;  %v566_v45 = vld [vmem:[%s1028_s3] sm:$0xff] }
  0x19   : > { %518 = vmatpush.bf16.msra.mxu0 %v809_v9 }
  0x1a   : > { %531 = vmatpush.bf16.msra.mxu1 %v817_v10 }
  0x1b   : > { %544 = vmatpush.bf16.msra.mxu2 %v825_v11 }
  0x1d   : > { %519 = vmatpush.bf16.msra.mxu0 %v808_v12 }
  0x1e   : > { %532 = vmatpush.bf16.msra.mxu1 %v816_v13 }
  0x1f   : > { %545 = vmatpush.bf16.msra.mxu2 %v824_v14 }
  0x21   : > { %520 = vmatpush.bf16.msra.mxu0 %v807_v15 }
  0x22   : > { %533 = vmatpush.bf16.msra.mxu1 %v815_v16 }
  0x23   : > { %546 = vmatpush.bf16.msra.mxu2 %v823_v17 }
  0x25   : > { %521 = vmatpush.bf16.msra.mxu0 %v806_v18 }
  0x26   : > { %534 = vmatpush.bf16.msra.mxu1 %v814_v19 }
  0x27   : > { %547 = vmatpush.bf16.msra.mxu2 %v822_v21 }
  0x29   : > { %522 = vmatpush.bf16.msra.mxu0 %v805_v25 }
  0x2a   : > { %535 = vmatpush.bf16.msra.mxu1 %v813_v26 }
  0x2b   : > { %548 = vmatpush.bf16.msra.mxu2 %v821_v28 }
  0x2c   : > { %523 = vmatmul.bf16.vlgmr.msra.gmra.mxu0 %v365_v29 }
  0x2d   : > { %536 = vmatmul.bf16.vlgmr.msra.gmra.mxu1 %v366_v30 }
  0x2e   : > { %549 = vmatmul.bf16.vlgmr.msra.gmra.mxu2 %v367_v31 }
  0xa9   : > { %v524_v33 = vpop.f32.mrf.mxu0 }
  0xaa   : > { %v537_v34 = vpop.f32.mrf.mxu1 }
  0xab   : > { %v538_v35 = vadd.f32 %v537_v34, %v524_v33 }
  0xb1   : > { %v550_v37 = vpop.f32.mrf.mxu2  ;;  %v526_v39 = vpop.f32.mrf.mxu0 }
  0xb2   : > { %v551_v38 = vadd.f32 %v550_v37, %v538_v35  ;;  %v539_v40 = vpop.f32.mrf.mxu1 }
  0xb4   : > { %v554_v41 = vadd.f32 %v551_v38, %v309_v36 }
  0xb6   : > { %556 = vst.msk [vmem:[#allocation2] sm:$0xff] %vm307_vm0, %v554_v41 }
  0xb9   : > { %v552_v42 = vpop.f32.mrf.mxu2 }
  0xbd   : > { %v560_v44 = vld [vmem:[#allocation2] sm:$0xff] }
  0xbe   : > { %v565_v46 = vadd.f32 %v855_v43, %v560_v44 }
  0xc0   : > { %v567_v47 = vadd.f32 %v566_v45, %v565_v46 }
  0xc2   : > { %v568_v48 = vpack.c.bf16 %v567_v47, %v567_v47 }
  0xc4   : > { %570 = vst.msk [vmem:[%s302_s8] sm:$0xf] %vm569_vm1, %v568_v48 }
  0xc5 PF: > { %s14_s17 = sadd.s32 1, %s878_s17   ;;  %s1030_s15 = smov %s874_s16 }
  0xc6   : > { %p11_p5 = scmp.ge.s32.totalorder %s14_s17, 4   ;;  %s1031_s16 = smov %s1033_s18 }
  0xc8   :  { %13 = sbr.rel (!%p11_p5) target bundleno = 2 (0x2), region = 83 }

// kernel: videomae_feature_forward.14
= control target key start
LH: loop header
LB: loop body
LE: loop exit
PB: predicated region body
PF: predicated region fallthrough
CT: control target
= control target key end

     0   :  { %s911_s12 = smov 0   ;;  %s913_s13 = smov 0   ;;  %s1042_s0 = inlined_call_operand.vmem [shape: bf16[2,8,32], index: 0, kind: input, shape index: {}]   ;;  %s1043_s1 = inlined_call_operand.vmem [shape: bf16[2,8,32], index: 1, kind: input, shape index: {}]   ;;  %s1044_s2 = inlined_call_operand.vmem [shape: bf16[2,8,32], index: 2, kind: input, shape index: {}]   ;;  %s1045_s3 = inlined_call_operand.vmem [shape: bf16[2,8,32], index: 3, kind: output, shape index: {}]  }
   0x1   :  { %s915_s14 = smov 0  }
   0x2 LB: > { %s32_s15 = sadd.s32 1, %s876_s13  ;;  %p783_p0 = scmp.ge.s32.totalorder %s880_s14, 1  ;;  %s880_s14 = sphi %s915_s14, %s13_s14   ;;  %s876_s13 = sphi %s913_s13, %s1047_s13   ;;  %s872_s12 = sphi %s911_s12, %s1046_s12  }
   0x3   : > { %p34_p1 = scmp.ge.s32.totalorder %s32_s15, 2  ;;  %p190_p2 = scmp.lt.s32.totalorder %s880_s14, 3 }
   0x5   : > { %s1049_s15 = smov (%p34_p1, %s32_s15), 0  ;;  %p191_p3 = pnand %p783_p0, %p190_p2 }
   0x6   : > { %p232_p4 = scmp.lt.s32.totalorder (!%p191_p3), %s872_s12, 1  ;;  %s883_s23 = smov (!%p191_p3), 112  }
   0x7   : > { %194 = sbr.rel (%p191_p3) target bundleno = 1130 (0x46a), region = 32  ;;  %s884_s24 = smov (!%p191_p3), 104  }
   0x8   : > { %s885_s25 = smov (!%p191_p3), 120   ;;  %s888_s5 = smov (!%p191_p3), 8  }
   0x9   : > { %s889_s6 = smov (!%p191_p3), 24   ;;  %s890_s7 = smov (!%p191_p3), 16  }
   0xc   : > { %s1051_s12 = smov (!%p232_p4, %s872_s12), 1  ;;  %vm274_vm0 = vcmask 64512   ;;  %vm265_vm1 = vcmask 7168   ;;  %v882_v3 = vmov -inf   ;;  %v886_v11 = vmov 0  }
   0xd   : > { %s929_s16 = sshll.u32 %s1051_s12, 2  ;;  %266 = vst.msk [vmem:[#allocation2] sm:$0xff] %vm265_vm1, %v882_v3  ;;  %831 = vset.pattern.permute.xlu1 %v886_v11  ;;  %832 = vset.pattern.permute.xlu2 %v886_v11  ;;  %v887_v12 = vmov 0.0   ;;  %vm337_vm2 = vcmask 1043456   ;;  %vm622_vm3 = vcmask 60416   ;;  %vm638_vm4 = vcmask 126016  }
   0xe   : > { %s245_s19 = scalar_lea.vmem %s1043_s1, %s929_s16  ;;  %s238_s22 = scalar_lea.vmem %s1042_s0, %s929_s16  ;;  %267 = vst.msk [vmem:[#allocation2 + $0x8] sm:$0xff] %vm265_vm1, %v882_v3  ;;  %833 = vset.pattern.permute.xlu0 %v886_v11  ;;  %vm654_vm5 = vcmask 191616   ;;  %vm670_vm6 = vcmask 257216  }
   0xf   : > { %v280_v0 = vld [vmem:[%s245_s19] sm:$0xf]  ;;  %268 = vst.msk [vmem:[#allocation2 + $0x10] sm:$0xff] %vm265_vm1, %v882_v3  ;;  %s252_s28 = scalar_lea.vmem %s1044_s2, %s929_s16  ;;  %s1026_s4 = scalar_lea.vmem %s1045_s3, %s929_s16 }
  0x10   : > { %v287_v1 = vsel %vm274_vm0, %v280_v0, 0  ;;  %v279_v2 = vld [vmem:[%s238_s22] sm:$0xf]  ;;  %269 = vst.msk [vmem:[#allocation2 + $0x18] sm:$0xff] %vm265_vm1, %v882_v3  ;;  %v363_v4 = vunpack.c.l.b16 %v280_v0 }
  0x11   : > { %296 = vmatpush.bf16.xpose.msra.mxu0 %v287_v1  ;;  %v358_v9 = vunpack.c.l.b16 %v279_v2  ;;  %270 = vst.msk [vmem:[#allocation3] sm:$0xff] %vm265_vm1, %v887_v12  ;;  %v281_v20 = vld [vmem:[%s252_s28] sm:$0xf] }
  0x12   : > { %v364_v5 = vpack.c.b16 %v363_v4, %v363_v4  ;;  %271 = vst.msk [vmem:[#allocation3 + $0x8] sm:$0xff] %vm265_vm1, %v887_v12  ;;  %v339_v21 = vsel %vm337_vm2, %v281_v20, 0  ;;  %v421_v43 = vunpack.c.l.b16 %v281_v20 }
  0x13   : > { %v359_v10 = vpack.c.b16 %v358_v9, %v358_v9  ;;  %272 = vst.msk [vmem:[#allocation3 + $0x10] sm:$0xff] %vm265_vm1, %v887_v12  ;;  %348 = vmatpush.bf16.msra.mxu1 %v339_v21 }
  0x14   : > { %449 = vrot.lane.b32.xlu2 %v364_v5, %s883_s23  ;;  %273 = vst.msk [vmem:[#allocation3 + $0x18] sm:$0xff] %vm265_vm1, %v887_v12  ;;  %v958_v13 = vld [vmem:[#allocation2] sm:$0xff]  ;;  %v422_v44 = vpack.c.b16 %v421_v43, %v421_v43 }
  0x15   : > { %275 = vst.msk [vmem:[#allocation4] sm:$0xff] %vm274_vm0, %v887_v12  ;;  %v387_v51 = vld [vmem:[#allocation2 + $0x8] sm:$0xff] }
  0x16   : > { %276 = vst.msk [vmem:[#allocation4 + $0x8] sm:$0xff] %vm274_vm0, %v887_v12  ;;  %v471_v54 = vld [vmem:[#allocation2 + $0x10] sm:$0xff] }
  0x17   : > { %277 = vst.msk [vmem:[#allocation4 + $0x10] sm:$0xff] %vm274_vm0, %v887_v12  ;;  %v552_v47 = vld [vmem:[#allocation2 + $0x18] sm:$0xff] }
  0x18   : > { %788 = vmatmul.msk.bf16.vlgmr.msra.gmra.mxu0 %vm274_vm0, %v279_v2  ;;  %278 = vst.msk [vmem:[#allocation4 + $0x18] sm:$0xff] %vm274_vm0, %v887_v12  ;;  %v318_v1 = vld [vmem:[#allocation3] sm:$0xff] }
  0x1c   : > { %530 = vrot.lane.b32.xlu2 %v364_v5, %s884_s24 }
  0x24   : > { %528 = vrot.lane.b32.xlu2 %v359_v10, %s884_s24 }
  0x6e   : > { %v450_v19 = vpop.permute.xlu2 %449 }
  0x6f   : > { %v455_v22 = vsel %vm274_vm0, %v450_v19, 0 }
  0x70   : > { %464 = vmatpush.bf16.xpose.msrb.mxu1 %v455_v22  ;;  %v326_v22 = vld [vmem:[#allocation4] sm:$0xff] }
  0x76   : > { %v531_v23 = vpop.permute.xlu2 %530 }
  0x77   : > { %v536_v24 = vsel %vm274_vm0, %v531_v23, 0 }
  0x78   : > { %545 = vmatpush.bf16.xpose.msrb.mxu0 %v536_v24 }
  0x7e   : > { %v529_v25 = vpop.permute.xlu2 %528 }
  0x7f   : > { %794 = vmatmul.msk.bf16.vlgmr.msrb.gmra.mxu0 %vm274_vm0, %v529_v25 }
  0x95   : > { %v298_v6 = vpop.f32.mrf.mxu0 }
  0x96   : > { %v303_v7 = vsel %vm274_vm0, %v298_v6, -inf }
  0x97   : > { %304 = vmax.xlane.f32.xlu0 %v303_v7 }
  0x9d   : > { %v300_v8 = vpop.f32.mrf.mxu0 }
  0xab   : > { %365 = vrot.lane.b32.xlu0 %v364_v5, %s885_s25 }
  0xfc   : > { %v982_v33 = vpop.f32.mrf.mxu0 }
  0xfd   : > { %v553_v34 = vsel %vm274_vm0, %v982_v33, -inf }
  0xfe   : > { %554 = vmax.xlane.f32.xlu0 %v553_v34 }
 0x104   : > { %v549_v35 = vpop.f32.mrf.mxu0 }
 0x10a   : > { %v305_v14 = vpop.xlane.xlu0 %304 }
 0x10b   : > { %v961_v15 = vmax.f32 %v958_v13, %v305_v14 }
 0x10d   : > { %v307_v16 = vsub.f32 %v958_v13, %v961_v15  ;;  %356 = vst.msk [vmem:[#allocation2] sm:$0xff] %vm265_vm1, %v961_v15  ;;  %312 = vperm.xlu1 %831, %v961_v15  }
 0x10f   : > { %v308_v56 = vmul.f32 1.442695, %v307_v16 }
 0x115   : > { %360 = vrot.lane.b32.xlu1 %v359_v10, %s885_s25 }
 0x11d   : > { %447 = vrot.lane.b32.xlu1 %v359_v10, %s883_s23  ;;  %v366_v17 = vpop.permute.xlu0 %365 }
 0x11e   : > { %v371_v18 = vsel %vm274_vm0, %v366_v17, 0 }
 0x11f   : > { %380 = vmatpush.bf16.xpose.msra.mxu2 %v371_v18 }
 0x171   : > { %v555_v48 = vpop.xlane.xlu0 %554 }
 0x172   : > { %v556_v49 = vmax.f32 %v552_v47, %v555_v48 }
 0x174   : > { %v557_v50 = vsub.f32 %v552_v47, %v556_v49  ;;  %608 = vst.msk [vmem:[#allocation2 + $0x18] sm:$0xff] %vm265_vm1, %v556_v49 }
 0x176   : > { %v558_v21 = vmul.f32 1.442695, %v557_v50 }
 0x17f   : > { %v313_v26 = vpop.permute.xlu1 %312 }
 0x180   : > { %v315_v27 = vsub.f32 %v298_v6, %v313_v26 }
 0x182   : > { %v316_v28 = vmul.f32 1.442695, %v315_v27 }
 0x184   : > { %834 = vpow2.f32 %v316_v28 }
 0x185   : > { %836 = vpow2.f32 %v308_v56 }
 0x187   : > { %v361_v29 = vpop.permute.xlu1 %360 }
 0x188   : > { %790 = vmatmul.msk.bf16.vlgmr.msra.gmra.mxu2 %vm274_vm0, %v361_v29 }
 0x18a   : > { %v835_v30 = vpop.eup %834 }
 0x18b   : > { %v333_v31 = vpack.c.bf16 %v835_v30, %v835_v30  ;;  %v320_v46 = vsel %vm274_vm0, %v835_v30, 0.0  ;;  %v837_v61 = vpop.eup %836 }
 0x18c   : > { %v319_v3 = vmul.f32 %v837_v61, %v318_v1 }
 0x18d   : > { %789 = vmatmul.msk.bf16.vlgmr.msra.gmra.mxu1 %vm274_vm0, %v333_v31 }
 0x18f   : > { %v448_v32 = vpop.permute.xlu1 %447 }
 0x19d   : > { %792 = vmatmul.msk.bf16.vlgmr.msrb.gmra.mxu1 %vm274_vm0, %v448_v32 }
 0x20a   : > { %v986_v36 = vpop.f32.mrf.mxu1 }
 0x20b   : > { %v382_v37 = vpop.f32.mrf.mxu2 }
 0x20c   : > { %v388_v38 = vsel %vm274_vm0, %v382_v37, -inf }
 0x20d   : > { %389 = vmax.xlane.f32.xlu1 %v388_v38 }
 0x212   : > { %v352_v39 = vpop.f32.mrf.mxu1 }
 0x213   : > { %v384_v40 = vpop.f32.mrf.mxu2 }
 0x21a   : > { %v989_v41 = vpop.f32.mrf.mxu1 }
 0x21b   : > { %v472_v42 = vsel %vm274_vm0, %v989_v41, -inf }
 0x21c   : > { %473 = vmax.xlane.f32.xlu2 %v472_v42 }
 0x222   : > { %v468_v45 = vpop.f32.mrf.mxu1 }
 0x226   : > { %423 = vrot.lane.b32.xlu1 %v422_v44, %s885_s25 }
 0x22e   : > { %504 = vrot.lane.b32.xlu1 %v422_v44, %s883_s23 }
 0x258   : > { %321 = vadd.xlane.f32.xlu1 %v320_v46  ;;  %v412_v46 = vld [vmem:[#allocation4 + $0x8] sm:$0xff] }
 0x280   : > { %v390_v52 = vpop.xlane.xlu1 %389 }
 0x281   : > { %v391_v53 = vmax.f32 %v387_v51, %v390_v52 }
 0x283   : > { %446 = vst.msk [vmem:[#allocation2 + $0x8] sm:$0xff] %vm265_vm1, %v391_v53  ;;  %397 = vperm.xlu2 %832, %v391_v53   ;;  %v392_v59 = vsub.f32 %v387_v51, %v391_v53  ;;  %v577_v53 = vld [vmem:[#allocation4 + $0x18] sm:$0xff] }
 0x285   : > { %v393_v60 = vmul.f32 1.442695, %v392_v59 }
 0x287   : > { %838 = vpow2.f32 %v393_v60 }
 0x28b   : > { %562 = vperm.xlu2 %832, %v556_v49  }
 0x28d   : > { %v839_v62 = vpop.eup %838 }
 0x28f   : > { %v474_v55 = vpop.xlane.xlu2 %473 }
 0x290   : > { %v475_v57 = vmax.f32 %v471_v54, %v474_v55 }
 0x292   : > { %v476_v58 = vsub.f32 %v471_v54, %v475_v57  ;;  %527 = vst.msk [vmem:[#allocation2 + $0x10] sm:$0xff] %vm265_vm1, %v475_v57  ;;  %481 = vperm.xlu0 %833, %v475_v57  }
 0x293   : > { %585 = vrot.lane.b32.xlu2 %v422_v44, %s884_s24 }
 0x294   : > { %v477_v27 = vmul.f32 1.442695, %v476_v58 }
 0x298   : > { %v424_v63 = vpop.permute.xlu1 %423 }
 0x299   : > { %v429_v2 = vsel %vm337_vm2, %v424_v63, 0 }
 0x29a   : > { %438 = vmatpush.bf16.msra.mxu3 %v429_v2 }
 0x29b   : > { %329 = vperm.xlu2 %832, %v837_v61   ;;  %v488_v61 = vld [vmem:[#allocation3 + $0x10] sm:$0xff] }
 0x2a0   : > { %v505_v0 = vpop.permute.xlu1 %504 }
 0x2a1   : > { %v510_v15 = vsel %vm337_vm2, %v505_v0, 0 }
 0x2a2   : > { %519 = vmatpush.bf16.msrb.mxu3 %v510_v15 }
 0x2a3   : > { %415 = vperm.xlu2 %832, %v839_v62  }
 0x2cb   : > { %v322_v4 = vpop.xlane.xlu1 %321 }
 0x2cc   : > { %v323_v5 = vadd.f32 %v322_v4, %v319_v3 }
 0x2ce   : > { %325 = vst.msk [vmem:[#allocation3] sm:$0xff] %vm265_vm1, %v323_v5 }
 0x2d5   : > { %v612_v35 = vld [vmem:[#allocation3] sm:$0xff] }
 0x2dd   : > { %v398_v6 = vpop.permute.xlu2 %397 }
 0x2de   : > { %v400_v7 = vsub.f32 %v382_v37, %v398_v6  ;;  %v404_v37 = vld [vmem:[#allocation3 + $0x8] sm:$0xff]  ;;  %v496_v6 = vld [vmem:[#allocation4 + $0x10] sm:$0xff] }
 0x2df   : > { %v405_v38 = vmul.f32 %v839_v62, %v404_v37 }
 0x2e0   : > { %v401_v8 = vmul.f32 1.442695, %v400_v7 }
 0x2e2   : > { %840 = vpow2.f32 %v401_v8 }
 0x2e5   : > { %v563_v9 = vpop.permute.xlu2 %562 }
 0x2e6   : > { %v565_v10 = vsub.f32 %v982_v33, %v563_v9 }
 0x2e8   : > { %v841_v11 = vpop.eup %840  ;;  %v566_v12 = vmul.f32 1.442695, %v565_v10 }
 0x2e9   : > { %v406_v13 = vsel %vm274_vm0, %v841_v11, 0.0  ;;  %v419_v14 = vpack.c.bf16 %v841_v11, %v841_v11 }
 0x2ea   : > { %842 = vpow2.f32 %v566_v12  ;;  %407 = vadd.xlane.f32.xlu0 %v406_v13 }
 0x2eb   : > { %791 = vmatmul.msk.bf16.vlgmr.msra.gmra.mxu3 %vm274_vm0, %v419_v14  ;;  %844 = vpow2.f32 %v558_v21 }
 0x2ec   : > { %846 = vpow2.f32 %v477_v27 }
 0x2ed   : > { %v586_v16 = vpop.permute.xlu2 %585 }
 0x2ee   : > { %v591_v17 = vsel %vm337_vm2, %v586_v16, 0 }
 0x2ef   : > { %600 = vmatpush.bf16.msrb.mxu2 %v591_v17 }
 0x2f0   : > { %v843_v18 = vpop.eup %842 }
 0x2f1   : > { %v571_v19 = vsel %vm274_vm0, %v843_v18, 0.0  ;;  %v584_v20 = vpack.c.bf16 %v843_v18, %v843_v18  ;;  %v845_v26 = vpop.eup %844 }
 0x2f2   : > { %572 = vadd.xlane.f32.xlu1 %v571_v19  ;;  %v847_v31 = vpop.eup %846 }
 0x2f3   : > { %795 = vmatmul.msk.bf16.vlgmr.msrb.gmra.mxu2 %vm274_vm0, %v584_v20  ;;  %v489_v62 = vmul.f32 %v847_v31, %v488_v61 }
 0x2f5   : > { %v330_v23 = vpop.permute.xlu2 %329 }
 0x2f6   : > { %v332_v24 = vmul.f32 %v330_v23, %v326_v22 }
 0x2f8   : > { %v354_v25 = vadd.f32 %v986_v36, %v332_v24 }
 0x2fa   : > { %355 = vst.msk [vmem:[#allocation4] sm:$0xff] %vm274_vm0, %v354_v25 }
 0x2fd   : > { %v416_v47 = vpop.permute.xlu2 %415 }
 0x2fe   : > { %580 = vperm.xlu0 %833, %v845_v26   ;;  %v418_v48 = vmul.f32 %v416_v47, %v412_v46 }
 0x301   : > { %v614_v1 = vld [vmem:[#allocation4] sm:$0xff] }
 0x304   : > { %v482_v28 = vpop.permute.xlu0 %481 }
 0x305   : > { %v484_v29 = vsub.f32 %v989_v41, %v482_v28  ;;  %v569_v41 = vld [vmem:[#allocation3 + $0x18] sm:$0xff] }
 0x306   : > { %v570_v42 = vmul.f32 %v845_v26, %v569_v41 }
 0x307   : > { %v485_v30 = vmul.f32 1.442695, %v484_v29 }
 0x309   : > { %848 = vpow2.f32 %v485_v30 }
 0x30a   : > { %850 = vrcp.f32 %v612_v35 }
 0x30b   : > { %499 = vperm.xlu1 %831, %v847_v31  }
 0x30f   : > { %v849_v32 = vpop.eup %848 }
 0x310   : > { %v490_v33 = vsel %vm274_vm0, %v849_v32, 0.0  ;;  %v503_v34 = vpack.c.bf16 %v849_v32, %v849_v32  ;;  %v851_v36 = vpop.eup %850 }
 0x311   : > { %491 = vadd.xlane.f32.xlu2 %v490_v33 }
 0x312   : > { %793 = vmatmul.msk.bf16.vlgmr.msrb.gmra.mxu3 %vm274_vm0, %v503_v34 }
 0x329   : > { %617 = vperm.xlu2 %832, %v851_v36  }
 0x35d   : > { %v408_v39 = vpop.xlane.xlu0 %407 }
 0x35e   : > { %v409_v40 = vadd.f32 %v408_v39, %v405_v38 }
 0x360   : > { %410 = vst.msk [vmem:[#allocation3 + $0x8] sm:$0xff] %vm265_vm1, %v409_v40 }
 0x365   : > { %v573_v43 = vpop.xlane.xlu1 %572 }
 0x366   : > { %v574_v44 = vadd.f32 %v573_v43, %v570_v42 }
 0x367   : > { %v624_v45 = vld [vmem:[#allocation3 + $0x8] sm:$0xff] }
 0x368   : > { %575 = vst.msk [vmem:[#allocation3 + $0x18] sm:$0xff] %vm265_vm1, %v574_v44  ;;  %852 = vrcp.f32 %v624_v45 }
 0x36e   : > { %v853_v49 = vpop.eup %852  ;;  %v440_v50 = vpop.f32.mrf.mxu3 }
 0x36f   : > { %v444_v51 = vadd.f32 %v440_v50, %v418_v48  ;;  %629 = vperm.xlu0 %833, %v853_v49   ;;  %v656_v52 = vld [vmem:[#allocation3 + $0x18] sm:$0xff] }
 0x370   : > { %854 = vrcp.f32 %v656_v52  ;;  %v581_v54 = vpop.permute.xlu0 %580 }
 0x371   : > { %445 = vst.msk [vmem:[#allocation4 + $0x8] sm:$0xff] %vm274_vm0, %v444_v51  ;;  %v583_v55 = vmul.f32 %v581_v54, %v577_v53 }
 0x376   : > { %v855_v56 = vpop.eup %854  ;;  %v442_v57 = vpop.f32.mrf.mxu3 }
 0x377   : > { %v602_v58 = vpop.f32.mrf.mxu2  ;;  %661 = vperm.xlu0 %833, %v855_v56  }
 0x378   : > { %v606_v59 = vadd.f32 %v602_v58, %v583_v55  ;;  %v626_v13 = vld [vmem:[#allocation4 + $0x8] sm:$0xff] }
 0x37a   : > { %607 = vst.msk [vmem:[#allocation4 + $0x18] sm:$0xff] %vm274_vm0, %v606_v59 }
 0x37d   : > { %v500_v7 = vpop.permute.xlu1 %499 }
 0x37e   : > { %v502_v8 = vmul.f32 %v500_v7, %v496_v6 }
 0x37f   : > { %v604_v60 = vpop.f32.mrf.mxu2 }
 0x381   : > { %v658_v17 = vld [vmem:[#allocation4 + $0x18] sm:$0xff] }
 0x384   : > { %v492_v63 = vpop.xlane.xlu2 %491 }
 0x385   : > { %v493_v0 = vadd.f32 %v492_v63, %v489_v62 }
 0x387   : > { %494 = vst.msk [vmem:[#allocation3 + $0x10] sm:$0xff] %vm265_vm1, %v493_v0 }
 0x38c   : > { %v618_v2 = vpop.permute.xlu2 %617 }
 0x38d   : > { %v620_v3 = vmul.f32 %v618_v2, %v614_v1 }
 0x38e   : > { %v640_v4 = vld [vmem:[#allocation3 + $0x10] sm:$0xff] }
 0x38f   : > { %v621_v5 = vpack.c.bf16 %v620_v3, %v620_v3  ;;  %856 = vrcp.f32 %v640_v4 }
 0x391   : > { %623 = vst.msk [vmem:[%s1026_s4] sm:$0xf] %vm622_vm3, %v621_v5 }
 0x395   : > { %v857_v9 = vpop.eup %856  ;;  %v521_v10 = vpop.f32.mrf.mxu3 }
 0x396   : > { %v525_v11 = vadd.f32 %v521_v10, %v502_v8  ;;  %645 = vperm.xlu1 %831, %v857_v9  }
 0x398   : > { %526 = vst.msk [vmem:[#allocation4 + $0x10] sm:$0xff] %vm274_vm0, %v525_v11 }
 0x39d   : > { %v523_v12 = vpop.f32.mrf.mxu3 }
 0x39f   : > { %v642_v21 = vld [vmem:[#allocation4 + $0x10] sm:$0xff] }
 0x3e1   : > { %v630_v14 = vpop.permute.xlu0 %629 }
 0x3e2   : > { %v632_v15 = vmul.f32 %v630_v14, %v626_v13 }
 0x3e4   : > { %v633_v16 = vpack.c.bf16 %v632_v15, %v632_v15 }
 0x3e6   : > { %635 = vrot.lane.b32.xlu1 %v633_v16, %s888_s5 }
 0x3e9   : > { %v662_v18 = vpop.permute.xlu0 %661 }
 0x3ea   : > { %v664_v19 = vmul.f32 %v662_v18, %v658_v17 }
 0x3ec   : > { %v665_v20 = vpack.c.bf16 %v664_v19, %v664_v19 }
 0x3ee   : > { %667 = vrot.lane.b32.xlu0 %v665_v20, %s889_s6 }
 0x408   : > { %v646_v22 = vpop.permute.xlu1 %645 }
 0x409   : > { %v648_v23 = vmul.f32 %v646_v22, %v642_v21 }
 0x40b   : > { %v649_v24 = vpack.c.bf16 %v648_v23, %v648_v23 }
 0x40d   : > { %651 = vrot.lane.b32.xlu2 %v649_v24, %s890_s7 }
 0x458   : > { %v636_v25 = vpop.permute.xlu1 %635 }
 0x459   : > { %639 = vst.msk [vmem:[%s1026_s4] sm:$0xf] %vm638_vm4, %v636_v25 }
 0x460   : > { %v668_v27 = vpop.permute.xlu0 %667 }
 0x467   : > { %v652_v26 = vpop.permute.xlu2 %651 }
 0x468   : > { %655 = vst.msk [vmem:[%s1026_s4] sm:$0xf] %vm654_vm5, %v652_v26 }
 0x469   : > { %671 = vst.msk [vmem:[%s1026_s4] sm:$0xf] %vm670_vm6, %v668_v27 }
 0x46a PF: > { %s13_s14 = sadd.s32 1, %s880_s14   ;;  %s1046_s12 = smov %s876_s13 }
 0x46b   : > { %p10_p5 = scmp.ge.s32.totalorder %s13_s14, 4   ;;  %s1047_s13 = smov %s1049_s15 }
 0x46d   :  { %12 = sbr.rel (!%p10_p5) target bundleno = 2 (0x2), region = 85 }

// kernel: videomae_feature_forward.17
= control target key start
LH: loop header
LB: loop body
LE: loop exit
PB: predicated region body
PF: predicated region fallthrough
CT: control target
= control target key end

     0   :  { %s707_s15 = smov 0   ;;  %s709_s16 = smov 0   ;;  %s774_s0 = inlined_call_operand.vmem [shape: bf16[16,64], index: 0, kind: input, shape index: {}]   ;;  %s775_s1 = inlined_call_operand.vmem [shape: bf16[64,32], index: 1, kind: input, shape index: {}]   ;;  %s776_s2 = inlined_call_operand.vmem [shape: f32[1,32], index: 2, kind: input, shape index: {}]   ;;  %s777_s3 = inlined_call_operand.vmem [shape: bf16[16,32], index: 3, kind: input, shape index: {}]   ;;  %s778_s4 = inlined_call_operand.vmem [shape: bf16[16,32], index: 4, kind: output, shape index: {}]  }
   0x1   :  { %s711_s17 = smov 0  }
   0x2 LB: > { %s33_s18 = sadd.s32 1, %s675_s16  ;;  %p601_p0 = scmp.ge.s32.totalorder %s679_s17, 1  ;;  %s679_s17 = sphi %s711_s17, %s14_s17   ;;  %s675_s16 = sphi %s709_s16, %s780_s16   ;;  %s671_s15 = sphi %s707_s15, %s779_s15  }
   0x3   : > { %p35_p1 = scmp.ge.s32.totalorder %s33_s18, 2  ;;  %p273_p2 = scmp.lt.s32.totalorder %s679_s17, 3 }
   0x5   : > { %s782_s18 = smov (%p35_p1, %s33_s18), 0  ;;  %p274_p3 = pnand %p601_p0, %p273_p2 }
   0x6   : > { %p333_p4 = scmp.lt.s32.totalorder (!%p274_p3), %s671_s15, 1  ;;  %s353_s6 = ssub.s32 (!%p274_p3), 0, %s671_s15 }
   0x7   : > { %277 = sbr.rel (%p274_p3) target bundleno = 171 (0xab), region = 36  ;;  %s603_s7 = smin.u32 (!%p274_p3), %s671_s15, %s353_s6 }
   0x8   : > { %s355_s8 = sand.u32 (!%p274_p3), 1, %s603_s7   ;;  %p352_p5 = scmp.lt.s32.totalorder (!%p274_p3), %s671_s15, 0 }
   0x9   : > { %s356_s9 = ssub.s32 (!%p274_p3), 0, %s355_s8 }
   0xc   : > { %v630_v0 = vld [vmem:[%s775_s1 + $0x18] sm:$0xff]  ;;  %vm395_vm0 = vcmask 261120   ;;  %v629_v1 = vld [vmem:[%s775_s1 + $0x10] sm:$0xff]  ;;  %v681_v2 = vmov 0.0   ;;  %s736_s23 = scalar_select %p333_p4, %s671_s15, 1  ;;  %v628_v3 = vld [vmem:[%s775_s1 + $0x8] sm:$0xff] }
   0xd   : > { %439 = vmatpush.bf16.msra.mxu0 %v630_v0  ;;  %396 = vst.msk [vmem:[#allocation2] sm:$0xff] %vm395_vm0, %v681_v2  ;;  %v627_v4 = vld [vmem:[%s775_s1] sm:$0xff]  ;;  %vm431_vm1 = vcmask 523264   ;;  %s784_s9 = smov (!%p352_p5, %s356_s9), %s355_s8  ;;  %vm464_vm2 = vcmask 257024  }
   0xe   : > { %s602_s26 = sshll.u32 %s736_s23, 2  ;;  %p605_p6 = scmp.lt.s32.totalorder %s784_s9, 0  ;;  %v656_v10 = vld [vmem:[%s776_s2] ss:$0 sm:$0xff] }
   0xf   : > { %s339_s5 = scalar_lea.vmem %s774_s0, %s602_s26  ;;  %s362_s10 = sadd.s32 2, %s784_s9 }
  0x10   : > { %v398_v5 = vld [vmem:[%s339_s5] sm:$0xf]  ;;  %s786_s10 = smov (!%p605_p6, %s362_s10), %s784_s9  ;;  %s389_s22 = scalar_lea.vmem %s778_s4, %s602_s26 }
  0x11   : > { %440 = vmatpush.bf16.msra.mxu0 %v629_v1  ;;  %p364_p7 = scmp.lt.s32.totalorder %s786_s10, 1 }
  0x13   : > { %s788_s10 = smov (!%p364_p7, %s786_s10), 1 }
  0x14   : > { %v397_v6 = vld [vmem:[#allocation2] sm:$0xff]  ;;  %s606_s11 = sshll.u32 %s788_s10, 2 }
  0x15   : > { %441 = vmatpush.bf16.msra.mxu0 %v628_v3  ;;  %s370_s14 = scalar_lea.vmem %s777_s3, %s606_s11 }
  0x16   : > { %v460_v9 = vld [vmem:[%s370_s14] sm:$0xf] }
  0x17   : > { %v461_v12 = vunpack.c.l.bf16 %v460_v9 }
  0x19   : > { %442 = vmatpush.bf16.msra.mxu0 %v627_v4 }
  0x1c   : > { %624 = vmatmul.msk.bf16.vlgmr.msra.gmra.mxu0 %vm431_vm1, %v398_v5 }
  0x99   : > { %v444_v7 = vpop.f32.mrf.mxu0 }
  0x9a   : > { %v448_v8 = vadd.f32 %v444_v7, %v397_v6 }
  0x9c   : > { %450 = vst.msk [vmem:[#allocation2] sm:$0xff] %vm395_vm0, %v448_v8 }
  0xa1   : > { %v446_v11 = vpop.f32.mrf.mxu0 }
  0xa3   : > { %v454_v13 = vld [vmem:[#allocation2] sm:$0xff] }
  0xa4   : > { %v459_v14 = vadd.f32 %v656_v10, %v454_v13 }
  0xa6   : > { %v462_v15 = vadd.f32 %v461_v12, %v459_v14 }
  0xa8   : > { %v463_v16 = vpack.c.bf16 %v462_v15, %v462_v15 }
  0xaa   : > { %465 = vst.msk [vmem:[%s389_s22] sm:$0xf] %vm464_vm2, %v463_v16 }
  0xab PF: > { %s14_s17 = sadd.s32 1, %s679_s17   ;;  %s779_s15 = smov %s675_s16 }
  0xac   : > { %p11_p8 = scmp.ge.s32.totalorder %s14_s17, 4   ;;  %s780_s16 = smov %s782_s18 }
  0xae   :  { %13 = sbr.rel (!%p11_p8) target bundleno = 2 (0x2), region = 83 }

// kernel: videomae_feature_forward.23
= control target key start
LH: loop header
LB: loop body
LE: loop exit
PB: predicated region body
PF: predicated region fallthrough
CT: control target
= control target key end

     0   :  { %vm25_vm0 = vcmask 261120   ;;  %v207_v3 = vmov 8.0   ;;  %s275_s0 = inlined_call_operand.vmem [shape: bf16[2,8,32], index: 0, kind: input, shape index: {}]   ;;  %s276_s1 = inlined_call_operand.vmem [shape: f32[1,32], index: 1, kind: input, shape index: {}]   ;;  %s277_s2 = inlined_call_operand.vmem [shape: f32[1,32], index: 2, kind: input, shape index: {}]   ;;  %s278_s3 = inlined_call_operand.vmem [shape: f32[32,16], index: 3, kind: input, shape index: {}]   ;;  %s279_s4 = inlined_call_operand.vmem [shape: f32[1,16], index: 4, kind: input, shape index: {}]   ;;  %s280_s5 = inlined_call_operand.hbm [shape: f32[2,16], index: 5, kind: output, shape index: {}]  }
   0x1   :  { %v166_v0 = vld [vmem:[%s275_s0] sm:$0xff]   ;;  %175 = vrcp.f32 %v207_v3 }
   0x2   :  { %v167_v1 = vunpack.c.l.bf16 %v166_v0  ;;  %v168_v2 = vunpack.c.h.bf16 %v166_v0 }
   0x3   :  { %10 = vsyncpa [#allocation3], 0  ;;  %vm51_vm2 = vcmask 1041409   ;;  %vm54_vm3 = vcmask 254976   ;;  %v208_v28 = vmov 32.0   ;;  %v115_v45 = vld [vmem:[%s278_s3 + $0x18] sm:$0xff] }
   0x4   :  { %v26_v4 = vsel %vm25_vm0, %v167_v1, 0.0  ;;  %v33_v5 = vsel %vm25_vm0, %v168_v2, 0.0  ;;  %177 = vrcp.f32 %v208_v28  ;;  %v114_v46 = vld [vmem:[%s278_s3 + $0x10] sm:$0xff]  ;;  %138 = vmatpush.msra.mxu0 %v115_v45  ;;  %v113_v47 = vld [vmem:[%s278_s3 + $0x8] sm:$0xff]  ;;  %v112_v48 = vld [vmem:[%s278_s3] sm:$0xff]  ;;  %s209_s7 = smov [#allocation2]  }
   0x5   :  { %v27_v6 = vrot.slane %v26_v4, 4  ;;  %v34_v7 = vrot.slane %v33_v5, 4  ;;  %v172_v61 = vld [vmem:[%s276_s1] ss:$0 sm:$0xff]  ;;  %s153_s1 = sshll.u32 %s209_s7, 4  ;;  %s155_s10 = sshll.u32 %s280_s5, 4  ;;  %s154_s1 = int_to_ptr.vmem [resolvable:$true] %s153_s1  ;;  %s156_s10 = int_to_ptr.hbm [resolvable:$true] %s155_s10 }
   0x6   :  { %139 = vmatpush.msra.mxu0 %v114_v46  ;;  %v173_v1 = vld [vmem:[%s277_s2] ss:$0 sm:$0xff]  ;;  %vm146_vm8 = vcmask 123904  }
   0x7   :  { %v28_v8 = vadd.f32 %v27_v6, %v26_v4  ;;  %v35_v9 = vadd.f32 %v34_v7, %v33_v5  ;;  %v176_v10 = vpop.eup %175  ;;  %v174_v6 = vld [vmem:[%s279_s4] ss:$0 sm:$0xff] }
   0x8   :  { %v41_v13 = vmul.f32 8.0, %v176_v10  ;;  %vm45_vm1 = vweird.f32 %v176_v10  ;;  %140 = vmatpush.msra.mxu0 %v113_v47 }
   0x9   :  { %v29_v11 = vrot.slane %v28_v8, 2  ;;  %v36_v12 = vrot.slane %v35_v9, 2 }
   0xa   :  { %v42_v16 = vsub.f32 1.0, %v41_v13  ;;  %v178_v29 = vpop.eup %177  ;;  %141 = vmatpush.msra.mxu0 %v112_v48 }
   0xb   :  { %v30_v14 = vadd.f32 %v29_v11, %v28_v8  ;;  %v37_v15 = vadd.f32 %v36_v12, %v35_v9  ;;  %v59_v30 = vmul.f32 32.0, %v178_v29  ;;  %vm63_vm4 = vweird.f32 %v178_v29 }
   0xc   :  { %v43_v19 = vmul.f32 %v176_v10, %v42_v16 }
   0xd   :  { %v31_v17 = vrot.slane %v30_v14, 1  ;;  %v38_v18 = vrot.slane %v37_v15, 1  ;;  %v60_v31 = vsub.f32 1.0, %v59_v30 }
   0xe   :  { %v44_v22 = vadd.f32 %v176_v10, %v43_v19 }
   0xf   :  { %v32_v20 = vadd.f32 %v31_v17, %v30_v14  ;;  %v39_v21 = vadd.f32 %v38_v18, %v37_v15  ;;  %v61_v32 = vmul.f32 %v178_v29, %v60_v31 }
  0x10   :  { %v46_v23 = vsel %vm45_vm1, %v176_v10, %v44_v22 }
  0x11   :  { %v47_v24 = vmul.f32 %v46_v23, %v32_v20  ;;  %v48_v25 = vmul.f32 %v46_v23, %v39_v21  ;;  %v62_v33 = vadd.f32 %v178_v29, %v61_v32 }
  0x13   :  { %v52_v26 = vsel %vm51_vm2, %v48_v25, %v47_v24  ;;  %v64_v34 = vsel %vm63_vm4, %v178_v29, %v62_v33 }
  0x14   :  { %v55_v27 = vsel %vm54_vm3, %v52_v26, 0.0 }
  0x15   :  { %56 = vadd.xlane.f32.xlu0 %v55_v27 }
  0x88   :  { %v57_v35 = vpop.xlane.xlu0 %56 }
  0x89   :  { %v65_v36 = vmul.f32 %v64_v34, %v57_v35 }
  0x8b   :  { %v67_v37 = vrot.slane %v65_v36, 1  ;;  %v70_v38 = vsub.f32 %v47_v24, %v65_v36 }
  0x8d   :  { %v71_v39 = vsub.f32 %v48_v25, %v67_v37  ;;  %v72_v41 = vmul.f32 %v70_v38, %v70_v38 }
  0x8f   :  { %v73_v40 = vmul.f32 %v71_v39, %v71_v39 }
  0x91   :  { %v76_v42 = vrot.slane %v73_v40, 7 }
  0x93   :  { %v77_v43 = vsel %vm51_vm2, %v76_v42, %v72_v41 }
  0x94   :  { %v79_v44 = vsel %vm54_vm3, %v77_v43, 0.0 }
  0x95   :  { %80 = vadd.xlane.f32.xlu0 %v79_v44 }
 0x108   :  { %v81_v49 = vpop.xlane.xlu0 %80 }
 0x109   :  { %v82_v50 = vmul.f32 %v81_v49, %v64_v34 }
 0x10b   :  { %v83_v51 = vadd.f32 1e-12, %v82_v50 }
 0x10d   :  { %179 = vrsqrt.f32 %v83_v51  ;;  %vm90_vm6 = vweird.f32 %v83_v51 }
 0x113   :  { %v180_v52 = vpop.eup %179 }
 0x114   :  { %v85_v53 = vmul.f32 %v180_v52, %v83_v51  ;;  %vm91_vm5 = vweird.f32 %v180_v52 }
 0x115   :  { %vm92_vm7 = vmor %vm90_vm6, %vm91_vm5 }
 0x116   :  { %v86_v54 = vmul.f32 %v180_v52, %v85_v53 }
 0x118   :  { %v87_v55 = vmul.f32 0.5, %v86_v54 }
 0x11a   :  { %v88_v56 = vsub.f32 1.5, %v87_v55 }
 0x11c   :  { %v89_v57 = vmul.f32 %v180_v52, %v88_v56 }
 0x11e   :  { %v93_v58 = vsel %vm92_vm7, %v180_v52, %v89_v57 }
 0x11f   :  { %v95_v59 = vrot.slane %v93_v58, 1  ;;  %v98_v60 = vmul.f32 %v93_v58, %v70_v38 }
 0x121   :  { %v99_v62 = vmul.f32 %v95_v59, %v71_v39  ;;  %v104_v63 = vmul.f32 %v172_v61, %v98_v60 }
 0x123   :  { %v105_v0 = vmul.f32 %v172_v61, %v99_v62  ;;  %v110_v3 = vadd.f32 %v173_v1, %v104_v63 }
 0x125   :  { %v111_v2 = vadd.f32 %v173_v1, %v105_v0 }
 0x127   :  { %v122_v4 = vrot.slane %v111_v2, 7 }
 0x129   :  { %v123_v5 = vsel %vm51_vm2, %v122_v4, %v110_v3 }
 0x12a   :  { %164 = vmatmul.msk.f32.vlgmr.msra.gmra.mxu0 %vm25_vm0, %v123_v5 }
 0x1a7   :  { %v143_v7 = vpop.f32.mrf.mxu0 }
 0x1a8   :  { %v144_v8 = vadd.f32 %v174_v6, %v143_v7 }
 0x1aa   :  { %147 = vst.msk [vmem:[#allocation2] sm:$0x3] %vm146_vm8, %v144_v8 }
 0x1ab   :  { %158 = dma.vmem_to_hbm [thread:$0]  %s154_s1, 32, %s156_s10, [#allocation3]  }
 0x1ac   :  { %205 = dma.done.wait [#allocation3], 32  }
 0x1ad   :  { %206 = vsyncadd [#allocation3], 4294967264 }
 0x1ae   :  { %163 = vsyncpa [#allocation3], 1 }

// kernel: videomae_feature_forward.16
= control target key start
LH: loop header
LB: loop body
LE: loop exit
PB: predicated region body
PF: predicated region fallthrough
CT: control target
= control target key end

     0   :  { %s581_s18 = smov 0   ;;  %s583_s19 = smov 0   ;;  %s639_s0 = inlined_call_operand.vmem [shape: bf16[16,32], index: 0, kind: input, shape index: {}]   ;;  %s640_s1 = inlined_call_operand.vmem [shape: f32[1,32], index: 1, kind: input, shape index: {}]   ;;  %s641_s2 = inlined_call_operand.vmem [shape: f32[1,32], index: 2, kind: input, shape index: {}]   ;;  %s642_s3 = inlined_call_operand.vmem [shape: bf16[32,64], index: 3, kind: input, shape index: {}]   ;;  %s643_s4 = inlined_call_operand.vmem [shape: f32[1,64], index: 4, kind: input, shape index: {}]   ;;  %s644_s5 = inlined_call_operand.vmem [shape: bf16[16,64], index: 5, kind: output, shape index: {}]  }
   0x1   :  { %s585_s20 = smov 0  }
   0x2 LB: > { %s27_s21 = sadd.s32 1, %s544_s19  ;;  %p476_p0 = scmp.ge.s32.totalorder %s548_s20, 1  ;;  %s548_s20 = sphi %s585_s20, %s15_s20   ;;  %s544_s19 = sphi %s583_s19, %s646_s19   ;;  %s540_s18 = sphi %s581_s18, %s645_s18  }
   0x3   : > { %p29_p1 = scmp.ge.s32.totalorder %s27_s21, 2  ;;  %p217_p2 = scmp.lt.s32.totalorder %s548_s20, 3 }
   0x5   : > { %s648_s21 = smov (%p29_p1, %s27_s21), 0  ;;  %p218_p3 = pnand %p476_p0, %p217_p2 }
   0x6   : > { %p253_p4 = scmp.lt.s32.totalorder (!%p218_p3), %s540_s18, 1 }
   0x7   : > { %221 = sbr.rel (%p218_p3) target bundleno = 448 (0x1c0), region = 40 }
   0xc   : > { %s650_s18 = smov (!%p253_p4, %s540_s18), 1  ;;  %vm278_vm0 = vcmask 261120   ;;  %v550_v3 = vmov 32.0   ;;  %v491_v15 = vld [vmem:[%s642_s3 + $0x8] sm:$0xff]  ;;  %v490_v17 = vld [vmem:[%s642_s3] sm:$0xff]  ;;  %vm319_vm5 = vcmask 257024  }
   0xd   : > { %s477_s22 = sshll.u32 %s650_s18, 2  ;;  %520 = vrcp.f32 %v550_v3  ;;  %352 = vmatpush.bf16.msra.mxu0 %v491_v15  ;;  %v517_v26 = vld [vmem:[%s640_s1] ss:$0 sm:$0xff]  ;;  %vm369_vm6 = vcmask 519168  }
   0xe   : > { %s256_s25 = scalar_lea.vmem %s639_s0, %s477_s22  ;;  %v518_v28 = vld [vmem:[%s641_s2] ss:$0 sm:$0xff]  ;;  %s270_s13 = scalar_lea.vmem %s644_s5, %s477_s22 }
   0xf   : > { %v276_v0 = vld [vmem:[%s256_s25] sm:$0xf] }
  0x10   : > { %v277_v1 = vunpack.c.l.bf16 %v276_v0  ;;  %v519_v34 = vld [vmem:[%s643_s4] ss:$0 sm:$0xff] }
  0x11   : > { %353 = vmatpush.bf16.msra.mxu0 %v490_v17 }
  0x12   : > { %v279_v2 = vsel %vm278_vm0, %v277_v1, 0.0 }
  0x13   : > { %280 = vadd.xlane.f32.xlu0 %v279_v2  ;;  %v521_v4 = vpop.eup %520 }
  0x14   : > { %v283_v5 = vmul.f32 32.0, %v521_v4  ;;  %vm287_vm1 = vweird.f32 %v521_v4 }
  0x16   : > { %v284_v6 = vsub.f32 1.0, %v283_v5 }
  0x18   : > { %v285_v7 = vmul.f32 %v521_v4, %v284_v6 }
  0x1a   : > { %v286_v8 = vadd.f32 %v521_v4, %v285_v7 }
  0x1c   : > { %v288_v9 = vsel %vm287_vm1, %v521_v4, %v286_v8 }
  0x86   : > { %v281_v10 = vpop.xlane.xlu0 %280 }
  0x87   : > { %v289_v11 = vmul.f32 %v288_v9, %v281_v10 }
  0x89   : > { %v290_v12 = vsub.f32 %v277_v1, %v289_v11 }
  0x8b   : > { %v291_v13 = vmul.f32 %v290_v12, %v290_v12 }
  0x8d   : > { %v292_v14 = vsel %vm278_vm0, %v291_v13, 0.0 }
  0x8e   : > { %293 = vadd.xlane.f32.xlu0 %v292_v14 }
 0x101   : > { %v294_v16 = vpop.xlane.xlu0 %293 }
 0x102   : > { %v295_v18 = vmul.f32 %v294_v16, %v288_v9 }
 0x104   : > { %v296_v19 = vadd.f32 1e-12, %v295_v18 }
 0x106   : > { %522 = vrsqrt.f32 %v296_v19  ;;  %vm303_vm3 = vweird.f32 %v296_v19 }
 0x10c   : > { %v523_v20 = vpop.eup %522 }
 0x10d   : > { %v298_v21 = vmul.f32 %v523_v20, %v296_v19  ;;  %vm304_vm2 = vweird.f32 %v523_v20 }
 0x10e   : > { %vm305_vm4 = vmor %vm303_vm3, %vm304_vm2 }
 0x10f   : > { %v299_v22 = vmul.f32 %v523_v20, %v298_v21 }
 0x111   : > { %v300_v23 = vmul.f32 0.5, %v299_v22 }
 0x113   : > { %v301_v24 = vsub.f32 1.5, %v300_v23 }
 0x115   : > { %v302_v25 = vmul.f32 %v523_v20, %v301_v24 }
 0x117   : > { %v306_v27 = vsel %vm305_vm4, %v523_v20, %v302_v25 }
 0x118   : > { %v307_v29 = vmul.f32 %v306_v27, %v290_v12 }
 0x11a   : > { %v312_v30 = vmul.f32 %v517_v26, %v307_v29 }
 0x11c   : > { %v317_v31 = vadd.f32 %v518_v28, %v312_v30 }
 0x11e   : > { %v318_v32 = vpack.c.bf16 %v317_v31, %v317_v31 }
 0x120   : > { %320 = vst.msk [vmem:[#allocation2] sm:$0xf] %vm319_vm5, %v318_v32 }
 0x127   : > { %v321_v33 = vld [vmem:[#allocation2] sm:$0xf] }
 0x128   : > { %487 = vmatmul.msk.bf16.vlgmr.msra.gmra.mxu0 %vm278_vm0, %v321_v33 }
 0x1a5   : > { %v355_v35 = vpop.f32.mrf.mxu0 }
 0x1a6   : > { %v356_v36 = vadd.f32 %v519_v34, %v355_v35 }
 0x1a8   : > { %v360_v37 = vmul.f32 0.044715, %v356_v36  ;;  %v359_v44 = vmul.f32 0.5, %v356_v36 }
 0x1aa   : > { %v361_v38 = vmul.f32 %v360_v37, %v356_v36 }
 0x1ac   : > { %v362_v39 = vmul.f32 %v361_v38, %v356_v36 }
 0x1ad   : > { %v357_v40 = vpop.f32.mrf.mxu0 }
 0x1ae   : > { %v363_v41 = vadd.f32 %v362_v39, %v356_v36 }
 0x1b0   : > { %v364_v42 = vmul.f32 0.7978846, %v363_v41 }
 0x1b2   : > { %524 = vtanh.f32 %v364_v42 }
 0x1b8   : > { %v525_v43 = vpop.eup %524 }
 0x1b9   : > { %v366_v45 = vadd.f32 1.0, %v525_v43 }
 0x1bb   : > { %v367_v46 = vmul.f32 %v366_v45, %v359_v44 }
 0x1bd   : > { %v368_v47 = vpack.c.bf16 %v367_v46, %v367_v46 }
 0x1bf   : > { %370 = vst.msk [vmem:[%s270_s13] sm:$0xf] %vm369_vm6, %v368_v47 }
 0x1c0 PF: > { %s15_s20 = sadd.s32 1, %s548_s20   ;;  %s645_s18 = smov %s544_s19 }
 0x1c1   : > { %p12_p5 = scmp.ge.s32.totalorder %s15_s20, 4   ;;  %s646_s19 = smov %s648_s21 }
 0x1c3   :  { %14 = sbr.rel (!%p12_p5) target bundleno = 2 (0x2), region = 80 }

</bundles_post_ra>
